<compile_context>
chip_gen: v7x
topology: tpu7x:2x2x1
jax: 0.10.0
libtpu: 0.0.40
codegen_flags: <defaults>
</compile_context>

<pallas_src>
import functools

import jax
import jax.numpy as jnp
from jax.experimental import pallas as pl
from jax.experimental.pallas import tpu as pltpu


def _round_up(n, m):
    return (n + m - 1) // m * m


def _projection_head_kernel(x_ref, w1_ref, b1_ref, w2_ref, b2_ref,
                            gamma_ref, beta_ref, o_ref, *,
                            matmul_dtype, approximate_gelu, precision):
    # ---- projection: Linear(E -> P); MXU with f32 accumulation ----
    x = x_ref[...].astype(matmul_dtype)
    projected = jnp.dot(x, w1_ref[...],
                        preferred_element_type=jnp.float32,
                        precision=precision) + b1_ref[...]

    # ---- GELU ----
    if approximate_gelu:
        # tanh-approx GELU: transcendental runs on the otherwise-idle EUP slot.
        c = jnp.float32(0.7978845608028654)   # sqrt(2/pi)
        inner = c * (projected
                     + jnp.float32(0.044715) * projected * projected * projected)
        h = 0.5 * projected * (1.0 + jnp.tanh(inner))
    else:
        # exact erf GELU: matches torch.nn.GELU() default semantics.
        h = 0.5 * projected * (1.0 + jax.lax.erf(
            projected * jnp.float32(0.7071067811865476)))

    # ---- fc: Linear(P -> P) ----
    y = jnp.dot(h.astype(matmul_dtype), w2_ref[...],
                preferred_element_type=jnp.float32,
                precision=precision) + b2_ref[...]

    # dropout (eval mode) == identity; residual add
    y = y + projected

    # ---- LayerNorm over the (unpadded) feature dim; no mask needed ----
    p = y.shape[-1]
    inv_p = jnp.float32(1.0 / p)
    mean = jnp.sum(y, axis=-1, keepdims=True) * inv_p
    centered = y - mean
    var = jnp.sum(centered * centered, axis=-1, keepdims=True) * inv_p
    out = (centered * jax.lax.rsqrt(var + jnp.float32(1e-5))
           * gamma_ref[...] + beta_ref[...])

    o_ref[...] = out.astype(o_ref.dtype)


@functools.partial(jax.jit, static_argnames=("block_b", "matmul_dtype",
                                              "approximate_gelu", "out_dtype"))
def projection_head(x, w1, b1, w2, b2, gamma, beta, *,
                    block_b=512, matmul_dtype=jnp.bfloat16,
                    approximate_gelu=False, out_dtype=None):
    """x: (B, E).  w1: (E, P), b1: (1, P), w2: (P, P), b2/gamma/beta: (1, P).

    Returns (B, P) in `out_dtype` (default: x.dtype; pass jnp.bfloat16 to halve
    the HBM writeback stream if downstream tolerates it)."""
    B, E = x.shape
    P = w1.shape[1]
    if out_dtype is None:
        out_dtype = x.dtype

    # MXU operand dtype for the tiny, grid-invariant weights (cast once here);
    # biases/gamma/beta stay f32 for the f32 epilogue.
    w1 = w1.astype(matmul_dtype)
    w2 = w2.astype(matmul_dtype)
    b1 = b1.astype(jnp.float32)
    b2 = b2.astype(jnp.float32)
    gamma = gamma.astype(jnp.float32)
    beta = beta.astype(jnp.float32)

    # Batch tiling: big tiles amortize per-step overhead, but never let the
    # clamp collapse the grid to a single step when B is large enough -- a
    # >=2-step grid lets the "parallel" batch axis shard across v7x's 2 TCs.
    # No batch padding: grid = cdiv and the last block may be partial.
    block_b_eff = _round_up(max(8, min(block_b, _round_up(pl.cdiv(B, 2), 8))), 8)
    grid = (pl.cdiv(B, block_b_eff),)

    # f32 parity path requires true-f32 MXU semantics (not bf16x3 default).
    precision = (jax.lax.Precision.HIGHEST
                 if matmul_dtype == jnp.float32 else None)

    kernel = functools.partial(_projection_head_kernel,
                               matmul_dtype=matmul_dtype,
                               approximate_gelu=approximate_gelu,
                               precision=precision)

    w_itemsize = jnp.dtype(matmul_dtype).itemsize
    cost = pl.CostEstimate(
        flops=2 * B * P * (E + P),
        transcendentals=B * P,
        bytes_accessed=(B * E * jnp.dtype(x.dtype).itemsize
                        + B * P * jnp.dtype(out_dtype).itemsize
                        + (E * P + P * P) * w_itemsize
                        + 4 * P * 4),
    )

    # Grid-invariant operands: constant index map => fetched once, resident.
    const = lambda shape: pl.BlockSpec(shape, lambda i: (0,) * len(shape))

    out = pl.pallas_call(
        kernel,
        out_shape=jax.ShapeDtypeStruct((B, P), out_dtype),
        grid=grid,
        in_specs=[
            pl.BlockSpec((block_b_eff, E), lambda i: (i, 0)),  # x tile
            const((E, P)),     # W1
            const((1, P)),     # b1
            const((P, P)),     # W2
            const((1, P)),     # b2
            const((1, P)),     # gamma
            const((1, P)),     # beta
        ],
        out_specs=pl.BlockSpec((block_b_eff, P), lambda i: (i, 0)),
        compiler_params=pltpu.CompilerParams(
            dimension_semantics=("parallel",)),  # batch axis -> v7x's 2 TCs
        cost_estimate=cost,
    )(x, w1, b1, w2, b2, gamma, beta)

    return out


def _reference(x, w1, b1, w2, b2, gamma, beta):
    hi = jax.lax.Precision.HIGHEST
    projected = jnp.dot(x, w1, precision=hi) + b1
    h = 0.5 * projected * (1.0 + jax.lax.erf(projected / jnp.sqrt(2.0)))
    y = jnp.dot(h, w2, precision=hi) + b2
    y = y + projected
    mean = jnp.mean(y, axis=-1, keepdims=True)
    var = jnp.mean((y - mean) ** 2, axis=-1, keepdims=True)
    return (y - mean) * jax.lax.rsqrt(var + 1e-5) * gamma + beta


if __name__ == "__main__":
    # Shapes consistent with the module's forward: (batch, embedding_dim).
    # batch=200 is not a multiple of the tile so the partial-last-block path is
    # exercised, and the clamp yields a 2-step grid (megacore-shardable on v7x).
    batch, embedding_dim, projection_dim = 200, 32, 64

    key = jax.random.PRNGKey(0)
    kx, k1, kb1, k2, kb2 = jax.random.split(key, 5)

    x = jax.random.normal(kx, (batch, embedding_dim), dtype=jnp.float32)

    # Deterministic parameter init (PyTorch-Linear-like uniform scaling).
    lim1 = 1.0 / jnp.sqrt(embedding_dim)
    w1 = jax.random.uniform(k1, (embedding_dim, projection_dim),
                            minval=-lim1, maxval=lim1, dtype=jnp.float32)
    b1 = jax.random.uniform(kb1, (1, projection_dim),
                            minval=-lim1, maxval=lim1, dtype=jnp.float32)

    lim2 = 1.0 / jnp.sqrt(projection_dim)
    w2 = jax.random.uniform(k2, (projection_dim, projection_dim),
                            minval=-lim2, maxval=lim2, dtype=jnp.float32)
    b2 = jax.random.uniform(kb2, (1, projection_dim),
                            minval=-lim2, maxval=lim2, dtype=jnp.float32)

    gamma = jnp.ones((1, projection_dim), dtype=jnp.float32)   # LayerNorm weight
    beta = jnp.zeros((1, projection_dim), dtype=jnp.float32)   # LayerNorm bias

    ref = _reference(x, w1, b1, w2, b2, gamma, beta)

    # f32 MXU (Precision.HIGHEST) path: tight parity with erf-GELU torch semantics.
    out_f32 = projection_head(x, w1, b1, w2, b2, gamma, beta,
                              matmul_dtype=jnp.float32)
    out_f32 = jax.block_until_ready(out_f32)
    assert out_f32.shape == (batch, projection_dim)
    assert jnp.allclose(out_f32, ref, atol=1e-4, rtol=1e-4)

    # Default fast path: bf16 MXU operands, f32 accumulation/epilogue, f32 out.
    out_bf16 = projection_head(x, w1, b1, w2, b2, gamma, beta)
    out_bf16 = jax.block_until_ready(out_bf16)
    assert out_bf16.shape == (batch, projection_dim)
    assert jnp.allclose(out_bf16, ref, atol=5e-2, rtol=5e-2)

    # bf16-output variant (halves the dominant HBM writeback stream).
    out_lo = projection_head(x, w1, b1, w2, b2, gamma, beta,
                             out_dtype=jnp.bfloat16)
    out_lo = jax.block_until_ready(out_lo)
    assert out_lo.shape == (batch, projection_dim)
    assert jnp.allclose(out_lo.astype(jnp.float32), ref, atol=7e-2, rtol=7e-2)

    print("KERNEL_OK")
</pallas_src>

<mosaic_0001>
module attributes {stable_mosaic.version = 11 : i64} {
  func.func @_projection_head_kernel(%arg0: i32, %arg1: memref<104x32xf32, #tpu.memory_space<vmem>>, %arg2: memref<32x64xf32, #tpu.memory_space<vmem>>, %arg3: memref<1x64xf32, #tpu.memory_space<vmem>>, %arg4: memref<64x64xf32, #tpu.memory_space<vmem>>, %arg5: memref<1x64xf32, #tpu.memory_space<vmem>>, %arg6: memref<1x64xf32, #tpu.memory_space<vmem>>, %arg7: memref<1x64xf32, #tpu.memory_space<vmem>>, %arg8: memref<104x64xf32, #tpu.memory_space<vmem>>) attributes {dimension_semantics = [#tpu.dimension_semantics<parallel>], iteration_bounds = array<i64: 2>, scalar_prefetch = 0 : i64, scratch_operands = 0 : i64, tpu.core_type = #tpu.core_type<tc>, window_params = [{transform_indices = @transform_0, window_bounds = array<i64: 104, 32>}, {pipeline_mode = #tpu.pipeline_mode<synchronous>, transform_indices = @transform_1, window_bounds = array<i64: 32, 64>}, {pipeline_mode = #tpu.pipeline_mode<synchronous>, transform_indices = @transform_2, window_bounds = array<i64: 1, 64>}, {pipeline_mode = #tpu.pipeline_mode<synchronous>, transform_indices = @transform_3, window_bounds = array<i64: 64, 64>}, {pipeline_mode = #tpu.pipeline_mode<synchronous>, transform_indices = @transform_4, window_bounds = array<i64: 1, 64>}, {pipeline_mode = #tpu.pipeline_mode<synchronous>, transform_indices = @transform_5, window_bounds = array<i64: 1, 64>}, {pipeline_mode = #tpu.pipeline_mode<synchronous>, transform_indices = @transform_6, window_bounds = array<i64: 1, 64>}, {transform_indices = @transform_7, window_bounds = array<i64: 104, 64>}]} {
    %c0 = arith.constant 0 : index
    %c0_0 = arith.constant 0 : index
    %0 = vector.load %arg1[%c0, %c0_0] : memref<104x32xf32, #tpu.memory_space<vmem>>, vector<104x32xf32>
    %c0_1 = arith.constant 0 : index
    %c0_2 = arith.constant 0 : index
    %1 = vector.load %arg2[%c0_1, %c0_2] : memref<32x64xf32, #tpu.memory_space<vmem>>, vector<32x64xf32>
    %cst = arith.constant dense<0.000000e+00> : vector<104x64xf32>
    %2 = tpu.matmul %0, %1, %cst {dimension_numbers = #tpu.dot_dimension_numbers<[1], [0], [0], [1], [0, 0, 1, 1], [], []>, precision = #tpu.contract_precision<fp32>} : vector<104x32xf32>, vector<32x64xf32>, vector<104x64xf32> -> vector<104x64xf32>
    %c0_3 = arith.constant 0 : index
    %c0_4 = arith.constant 0 : index
    %3 = vector.load %arg3[%c0_3, %c0_4] : memref<1x64xf32, #tpu.memory_space<vmem>>, vector<1x64xf32>
    %4 = vector.broadcast %3 : vector<1x64xf32> to vector<104x64xf32>
    %5 = arith.addf %2, %4 : vector<104x64xf32>
    %cst_5 = arith.constant 5.000000e-01 : f32
    %6 = vector.broadcast %cst_5 : f32 to vector<104x64xf32>
    %7 = arith.mulf %6, %5 : vector<104x64xf32>
    %cst_6 = arith.constant 0.707106769 : f32
    %8 = vector.broadcast %cst_6 : f32 to vector<104x64xf32>
    %9 = arith.mulf %5, %8 : vector<104x64xf32>
    %10 = math.erf %9 : vector<104x64xf32>
    %cst_7 = arith.constant 1.000000e+00 : f32
    %11 = vector.broadcast %cst_7 : f32 to vector<104x64xf32>
    %12 = arith.addf %11, %10 : vector<104x64xf32>
    %13 = arith.mulf %7, %12 : vector<104x64xf32>
    %c0_8 = arith.constant 0 : index
    %c0_9 = arith.constant 0 : index
    %14 = vector.load %arg4[%c0_8, %c0_9] : memref<64x64xf32, #tpu.memory_space<vmem>>, vector<64x64xf32>
    %cst_10 = arith.constant dense<0.000000e+00> : vector<104x64xf32>
    %15 = tpu.matmul %13, %14, %cst_10 {dimension_numbers = #tpu.dot_dimension_numbers<[1], [0], [0], [1], [0, 0, 1, 1], [], []>, precision = #tpu.contract_precision<fp32>} : vector<104x64xf32>, vector<64x64xf32>, vector<104x64xf32> -> vector<104x64xf32>
    %c0_11 = arith.constant 0 : index
    %c0_12 = arith.constant 0 : index
    %16 = vector.load %arg5[%c0_11, %c0_12] : memref<1x64xf32, #tpu.memory_space<vmem>>, vector<1x64xf32>
    %17 = vector.broadcast %16 : vector<1x64xf32> to vector<104x64xf32>
    %18 = arith.addf %15, %17 : vector<104x64xf32>
    %19 = arith.addf %18, %5 : vector<104x64xf32>
    %cst_13 = arith.constant dense<0.000000e+00> : vector<104xf32>
    %20 = vector.multi_reduction <add>, %19, %cst_13 [1] : vector<104x64xf32> to vector<104xf32>
    %21 = vector.shape_cast %20 : vector<104xf32> to vector<104x1xf32>
    %cst_14 = arith.constant 1.562500e-02 : f32
    %22 = vector.broadcast %cst_14 : f32 to vector<104x1xf32>
    %23 = arith.mulf %21, %22 : vector<104x1xf32>
    %24 = vector.broadcast %23 : vector<104x1xf32> to vector<104x64xf32>
    %25 = arith.subf %19, %24 : vector<104x64xf32>
    %26 = arith.mulf %25, %25 : vector<104x64xf32>
    %cst_15 = arith.constant dense<0.000000e+00> : vector<104xf32>
    %27 = vector.multi_reduction <add>, %26, %cst_15 [1] : vector<104x64xf32> to vector<104xf32>
    %28 = vector.shape_cast %27 : vector<104xf32> to vector<104x1xf32>
    %cst_16 = arith.constant 1.562500e-02 : f32
    %29 = vector.broadcast %cst_16 : f32 to vector<104x1xf32>
    %30 = arith.mulf %28, %29 : vector<104x1xf32>
    %cst_17 = arith.constant 9.99999974E-6 : f32
    %31 = vector.broadcast %cst_17 : f32 to vector<104x1xf32>
    %32 = arith.addf %30, %31 : vector<104x1xf32>
    %33 = math.rsqrt %32 : vector<104x1xf32>
    %34 = vector.broadcast %33 : vector<104x1xf32> to vector<104x64xf32>
    %35 = arith.mulf %25, %34 : vector<104x64xf32>
    %c0_18 = arith.constant 0 : index
    %c0_19 = arith.constant 0 : index
    %36 = vector.load %arg6[%c0_18, %c0_19] : memref<1x64xf32, #tpu.memory_space<vmem>>, vector<1x64xf32>
    %37 = vector.broadcast %36 : vector<1x64xf32> to vector<104x64xf32>
    %38 = arith.mulf %35, %37 : vector<104x64xf32>
    %c0_20 = arith.constant 0 : index
    %c0_21 = arith.constant 0 : index
    %39 = vector.load %arg7[%c0_20, %c0_21] : memref<1x64xf32, #tpu.memory_space<vmem>>, vector<1x64xf32>
    %40 = vector.broadcast %39 : vector<1x64xf32> to vector<104x64xf32>
    %41 = arith.addf %38, %40 : vector<104x64xf32>
    %c0_22 = arith.constant 0 : index
    %c0_23 = arith.constant 0 : index
    %42 = vector.load %arg8[%c0_22, %c0_23] : memref<104x64xf32, #tpu.memory_space<vmem>>, vector<104x64xf32>
    tpu.vector_store %arg8[%c0_22, %c0_23], %41 {strides = array<i32>} : memref<104x64xf32, #tpu.memory_space<vmem>>, vector<104x64xf32>,
    return
  }
  func.func @transform_0(%arg0: i32) -> (i32, i32) {
    %c0_i32 = arith.constant 0 : i32
    %c0_i32_0 = arith.constant 0 : i32
    return %arg0, %c0_i32 : i32, i32
  }
  func.func @transform_1(%arg0: i32) -> (i32, i32) {
    %c0_i32 = arith.constant 0 : i32
    %c0_i32_0 = arith.constant 0 : i32
    %c0_i32_1 = arith.constant 0 : i32
    return %c0_i32, %c0_i32_0 : i32, i32
  }
  func.func @transform_2(%arg0: i32) -> (i32, i32) {
    %c0_i32 = arith.constant 0 : i32
    %c0_i32_0 = arith.constant 0 : i32
    %c0_i32_1 = arith.constant 0 : i32
    return %c0_i32, %c0_i32_0 : i32, i32
  }
  func.func @transform_3(%arg0: i32) -> (i32, i32) {
    %c0_i32 = arith.constant 0 : i32
    %c0_i32_0 = arith.constant 0 : i32
    %c0_i32_1 = arith.constant 0 : i32
    return %c0_i32, %c0_i32_0 : i32, i32
  }
  func.func @transform_4(%arg0: i32) -> (i32, i32) {
    %c0_i32 = arith.constant 0 : i32
    %c0_i32_0 = arith.constant 0 : i32
    %c0_i32_1 = arith.constant 0 : i32
    return %c0_i32, %c0_i32_0 : i32, i32
  }
  func.func @transform_5(%arg0: i32) -> (i32, i32) {
    %c0_i32 = arith.constant 0 : i32
    %c0_i32_0 = arith.constant 0 : i32
    %c0_i32_1 = arith.constant 0 : i32
    return %c0_i32, %c0_i32_0 : i32, i32
  }
  func.func @transform_6(%arg0: i32) -> (i32, i32) {
    %c0_i32 = arith.constant 0 : i32
    %c0_i32_0 = arith.constant 0 : i32
    %c0_i32_1 = arith.constant 0 : i32
    return %c0_i32, %c0_i32_0 : i32, i32
  }
  func.func @transform_7(%arg0: i32) -> (i32, i32) {
    %c0_i32 = arith.constant 0 : i32
    %c0_i32_0 = arith.constant 0 : i32
    return %arg0, %c0_i32 : i32, i32
  }
}

</mosaic_0001>

<bundles_post_ra>
// kernel: projection_head.1
= control target key start
LH: loop header
LB: loop body
LE: loop exit
PB: predicated region body
PF: predicated region fallthrough
CT: control target
= control target key end

     0   :  { %s4439_s24 = smov 0   ;;  %s4441_s25 = smov 0   ;;  %s5910_s0 = inlined_call_operand.vmem [shape: f32[200,32], index: 0, kind: input, shape index: {}]   ;;  %s5911_s1 = inlined_call_operand.vmem [shape: f32[32,64], index: 1, kind: input, shape index: {}]   ;;  %s5912_s2 = inlined_call_operand.vmem [shape: f32[1,64], index: 2, kind: input, shape index: {}]   ;;  %s5913_s3 = inlined_call_operand.vmem [shape: f32[64,64], index: 3, kind: input, shape index: {}]   ;;  %s5914_s4 = inlined_call_operand.vmem [shape: f32[1,64], index: 4, kind: input, shape index: {}]   ;;  %s5915_s5 = inlined_call_operand.vmem [shape: f32[1,64], index: 5, kind: input, shape index: {}]   ;;  %s5916_s6 = inlined_call_operand.vmem [shape: f32[1,64], index: 6, kind: input, shape index: {}]   ;;  %s5917_s7 = inlined_call_operand.vmem [shape: f32[200,64], index: 7, kind: output, shape index: {}]  }
   0x1   :  { %s4443_s26 = smov 0  }
   0x2 LB: > { %s4452_s27 = sadd.s32 4294967295, %s4362_s26   ;;  %s4454_s28 = sadd.s32 1, %s4362_s26   ;;  %s4362_s26 = sphi %s4443_s26, %s5962_s26   ;;  %s4358_s25 = sphi %s4441_s25, %s5961_s25   ;;  %s4354_s24 = sphi %s4439_s24, %s5960_s24  }
   0x3   : > { %s173_s29 = ssub.s32 %s4362_s26, %s4454_s28  ;;  %s176_s30 = sadd.s32 1, %s4358_s25 }
   0x4   : > { %p174_p0 = scmp.eq.s32.totalorder %s173_s29, 0  ;;  %p186_p1 = scmp.ne.s32.totalorder %s4358_s25, %s4354_s24 }
   0x5   : > { %p187_p2 = scmp.eq.s32.totalorder %s4452_s27, 1  ;;  %p3041_p3 = scmp.ge.s32.totalorder %s4362_s26, 1 }
   0x6   : > { %s4462_s8 = scalar_select %p174_p0, %s4358_s25, %s176_s30  }
   0x7   : > { %p4464_p4 = por %p187_p2, %p186_p1  ;;  %p246_p5 = scmp.lt.s32.totalorder %s4362_s26, 3 }
   0x9   : > { %p247_p6 = pnand %p3041_p3, %p246_p5 }
   0xa   : > { %v313_v0 = vld [vmem:[%s5911_s1] sm:$0xff] (!%p247_p6)  ;;  %v314_v1 = vld [vmem:[%s5911_s1 + $0x8] sm:$0xff] (!%p247_p6)  ;;  %v315_v2 = vld [vmem:[%s5911_s1 + $0x10] sm:$0xff] (!%p247_p6)  ;;  %v4396_v3 = vmov (!%p247_p6), 0.0|0.0   ;;  %vm4397_vm0 = vmmov (!%p247_p6), 0   ;;  %v4398_v8 = vmov (!%p247_p6), 0.0  }
   0xb   : > { %250 = sbr.rel (%p247_p6) target bundleno = 1436 (0x59c), region = 48  ;;  %3900 = vmatprep.subr.bf16.mxu0 (!%p247_p6), %v4396_v3  ;;  %v365_v4 = vand.u32 (!%p247_p6), 4294901760, %v313_v0  ;;  %v368_v5 = vand.u32 (!%p247_p6), 4294901760, %v314_v1  ;;  %v316_v6 = vld [vmem:[%s5911_s1 + $0x18] sm:$0xff] (!%p247_p6)  ;;  %v371_v7 = vand.u32 (!%p247_p6), 4294901760, %v315_v2  ;;  %3296 = vmatprep.mubr.msk.f32.mxu0 (!%p247_p6), %vm4397_vm0, %v4398_v8  ;;  %vm324_vm1 = vcmask (!%p247_p6), 261120  }
   0xc   : > { %s4484_s18 = smul.u32 (!%p247_p6), 13, %s4452_s27  ;;  %v374_v9 = vand.u32 (!%p247_p6), 4294901760, %v316_v6  ;;  %4008 = vmatprep.subr.bf16.mxu1 (!%p247_p6), %v4396_v3  ;;  %3589 = vmatprep.mubr.msk.f32.mxu1 (!%p247_p6), %vm4397_vm0, %v4398_v8  ;;  %vm1445_vm2 = vcmask (!%p247_p6), 523264   ;;  %s278_s11 = sand.u32 (!%p247_p6), 1, %s4354_s24  }
   0xd   : > { %v4489_v10 = vpack.c.bf16 (!%p247_p6), %v368_v5, %v365_v4  ;;  %v4491_v11 = vsub.f32 (!%p247_p6), %v313_v0, %v365_v4  ;;  %v4493_v12 = vsub.f32 (!%p247_p6), %v314_v1, %v368_v5  ;;  %v4499_v14 = vsub.f32 (!%p247_p6), %v315_v2, %v371_v7  ;;  %s4159_s14 = smul.u32 (!%p247_p6), 104, %s278_s11 }
   0xe   : > { %p286_p7 = scmp.lt.s32.totalorder (!%p247_p6), %s4484_s18, 24  ;;  %v4497_v13 = vpack.c.bf16 (!%p247_p6), %v374_v9, %v371_v7  ;;  %v4501_v15 = vsub.f32 (!%p247_p6), %v316_v6, %v374_v9 }
   0xf   : > { %3902 = vmatpush3.bf16.msra.mxu0 (!%p247_p6), %v4489_v10  ;;  %v566_v16 = vand.u32 (!%p247_p6), 4294901760, %v4491_v11  ;;  %v573_v17 = vand.u32 (!%p247_p6), 4294901760, %v4493_v12  ;;  %v580_v22 = vand.u32 (!%p247_p6), 4294901760, %v4499_v14  ;;  %s5758_s24 = scalar_lea.vmem (!%p247_p6), [#allocation2], %s4159_s14  }
  0x10   : > { %3903 = vmatprep.subr.bf16.mxu0 (!%p247_p6), %v4396_v3  ;;  %v587_v23 = vand.u32 (!%p247_p6), 4294901760, %v4501_v15 }
  0x11   : > { %v567_v19 = vsub.f32 (!%p247_p6), %v4491_v11, %v566_v16  ;;  %v574_v25 = vsub.f32 (!%p247_p6), %v4493_v12, %v573_v17  ;;  %v581_v42 = vsub.f32 (!%p247_p6), %v4499_v14, %v580_v22 }
  0x12   : > { %s287_s19 = scalar_select %p286_p7, %s4484_s18, 24  ;;  %v588_v43 = vsub.f32 %v4501_v15, %v587_v23 }
  0x13   : > { %3905 = vmatpush3.bf16.msra.mxu0 %v4497_v13  ;;  %v568_v40 = vand.u32 4294901760, %v567_v19  ;;  %v575_v41 = vand.u32 4294901760, %v574_v25  ;;  %v582_v54 = vand.u32 4294901760, %v581_v42  ;;  %s2781_s17 = ssub.s32 (%p4464_p4), 25, %s4484_s18 }
  0x14   : > { %s3042_s20 = sshll.u32 %s287_s19, 3  ;;  %3906 = vmatprep.subr.bf16.mxu0 %v4396_v3  ;;  %v589_v55 = vand.u32 4294901760, %v588_v43  ;;  %s3059_s19 = smul.u32 (%p4464_p4), 104, %s4452_s27 }
  0x15   : > { %s4510_s23 = scalar_lea.vmem %s5910_s0, %s3042_s20  ;;  %v3907_v53 = vpack.c.bf16 %v575_v41, %v568_v40  ;;  %p2782_p8 = scmp.lt.s32.totalorder (%p4464_p4), %s2781_s17, 13 }
  0x16   : > { %v300_v18 = vld [vmem:[%s4510_s23] sm:$0xff]  ;;  %v301_v20 = vld [vmem:[%s4510_s23 + $0x8] sm:$0xff]  ;;  %v302_v21 = vld [vmem:[%s4510_s23 + $0x10] sm:$0xff]  ;;  %v3910_v63 = vpack.c.bf16 %v589_v55, %v582_v54  ;;  %s5828_s22 = scalar_lea.vmem (%p4464_p4), %s5917_s7, %s3059_s19  }
  0x17   : > { %v326_v24 = vsel %vm324_vm1, %v300_v18, 0  ;;  %v329_v26 = vsel %vm324_vm1, %v301_v20, 0  ;;  %v332_v27 = vsel %vm324_vm1, %v302_v21, 0  ;;  %v303_v28 = vld [vmem:[%s4510_s23 + $0x18] sm:$0xff]  ;;  %v304_v29 = vld [vmem:[%s4510_s23 + $0x20] sm:$0xff]  ;;  %v305_v39 = vld [vmem:[%s4510_s23 + $0x28] sm:$0xff] }
  0x18   : > { %v4530_v30 = vand.u32 4294901760, %v326_v24  ;;  %v4532_v31 = vand.u32 4294901760, %v329_v26  ;;  %v4534_v32 = vand.u32 4294901760, %v332_v27  ;;  %v335_v33 = vsel %vm324_vm1, %v303_v28, 0  ;;  %v306_v52 = vld [vmem:[%s4510_s23 + $0x30] sm:$0xff]  ;;  %v307_v0 = vld [vmem:[%s4510_s23 + $0x38] sm:$0xff] }
  0x19   : > { %v338_v34 = vsel %vm324_vm1, %v304_v29, 0  ;;  %v4547_v38 = vand.u32 4294901760, %v335_v33  ;;  %v341_v47 = vsel %vm324_vm1, %v305_v39, 0  ;;  %v344_v58 = vsel %vm324_vm1, %v306_v52, 0  ;;  %v308_v9 = vld [vmem:[%s4510_s23 + $0x40] sm:$0xff]  ;;  %v310_v39 = vld [vmem:[%s4510_s23 + $0x50] sm:$0xff] }
  0x1a   : > { %v4539_v35 = vsub.f32 %v326_v24, %v4530_v30  ;;  %v4542_v36 = vsub.f32 %v329_v26, %v4532_v31  ;;  %v4545_v37 = vsub.f32 %v332_v27, %v4534_v32  ;;  %v4558_v46 = vand.u32 4294901760, %v338_v34  ;;  %v309_v26 = vld [vmem:[%s4510_s23 + $0x48] sm:$0xff]  ;;  %v311_v52 = vld [vmem:[%s4510_s23 + $0x58] sm:$0xff] }
  0x1b   : > { %v4569_v51 = vsub.f32 %v335_v33, %v4547_v38  ;;  %v4572_v57 = vand.u32 4294901760, %v341_v47  ;;  %v4586_v1 = vand.u32 4294901760, %v344_v58  ;;  %v347_v7 = vsel %vm324_vm1, %v307_v0, 0 }
  0x1c   : > { %v435_v44 = vand.u32 4294901760, %v4539_v35  ;;  %v445_v45 = vand.u32 4294901760, %v4542_v36  ;;  %v455_v50 = vand.u32 4294901760, %v4545_v37  ;;  %v4580_v62 = vsub.f32 %v338_v34, %v4558_v46 }
  0x1d   : > { %v465_v61 = vand.u32 4294901760, %v4569_v51  ;;  %v4593_v6 = vsub.f32 %v341_v47, %v4572_v57  ;;  %v4601_v18 = vsub.f32 %v344_v58, %v4586_v1  ;;  %v4607_v24 = vand.u32 4294901760, %v347_v7 }
  0x1e   : > { %v436_v48 = vsub.f32 %v4539_v35, %v435_v44  ;;  %v446_v49 = vsub.f32 %v4542_v36, %v445_v45  ;;  %v456_v60 = vsub.f32 %v4545_v37, %v455_v50  ;;  %v475_v5 = vand.u32 4294901760, %v4580_v62 }
  0x1f   : > { %v466_v4 = vsub.f32 %v4569_v51, %v465_v61  ;;  %v485_v21 = vand.u32 4294901760, %v4593_v6  ;;  %v350_v25 = vsel %vm324_vm1, %v308_v9, 0  ;;  %v495_v27 = vand.u32 4294901760, %v4601_v18 }
  0x20   : > { %v437_v56 = vand.u32 4294901760, %v436_v48  ;;  %v447_v59 = vand.u32 4294901760, %v446_v49  ;;  %v457_v2 = vand.u32 4294901760, %v456_v60  ;;  %v476_v20 = vsub.f32 %v4580_v62, %v475_v5  ;;  %v312_v60 = vld [vmem:[%s4510_s23 + $0x60] sm:$0xff] }
  0x21   : > { %v467_v19 = vand.u32 4294901760, %v466_v4  ;;  %v486_v29 = vsub.f32 %v4593_v6, %v485_v21  ;;  %v4618_v33 = vsub.f32 %v347_v7, %v4607_v24  ;;  %v4620_v34 = vand.u32 4294901760, %v350_v25 }
  0x22   : > { %3297 = vmatmul.mubr.f32.vlgmr.msra.gmra.mrb[0].mxu0 %v437_v56  ;;  %v477_v28 = vand.u32 4294901760, %v476_v20  ;;  %v353_v40 = vsel %vm324_vm1, %v309_v26, 0  ;;  %v496_v41 = vsub.f32 %v4601_v18, %v495_v27  ;;  %v356_v42 = vsel %vm324_vm1, %v310_v39, 0 }
  0x23   : > { %3908 = vmatpush3.bf16.msra.mxu0 %v3907_v53  ;;  %3299 = vmatprep.mubr.msk.f32.mxu0 %vm4397_vm0, %v4398_v8  ;;  %v487_v43 = vand.u32 4294901760, %v486_v29  ;;  %v505_v47 = vand.u32 4294901760, %v4618_v33  ;;  %v4632_v48 = vsub.f32 %v350_v25, %v4620_v34  ;;  %v4634_v49 = vand.u32 4294901760, %v353_v40 }
  0x24   : > { %3909 = vmatprep.subr.bf16.mxu0 %v4396_v3  ;;  %v497_v53 = vand.u32 4294901760, %v496_v41  ;;  %v4639_v54 = vand.u32 4294901760, %v356_v42  ;;  %v362_v0 = vsel %vm324_vm1, %v312_v60, 0  ;;  %v4677_v29 = vpack.c.bf16 %v573_v17, %v566_v16 }
  0x25   : > { %v506_v55 = vsub.f32 %v4618_v33, %v505_v47  ;;  %v515_v56 = vand.u32 4294901760, %v4632_v48  ;;  %v4646_v58 = vsub.f32 %v353_v40, %v4634_v49  ;;  %v4667_v20 = vand.u32 4294901760, %v362_v0 }
  0x26   : > { %3300 = vmatmul.mubr.f32.gmra.mrb[2].mxu0 %v447_v59  ;;  %v359_v59 = vsel %vm324_vm1, %v311_v52, 0  ;;  %v4660_v9 = vsub.f32 %v356_v42, %v4639_v54  ;;  %v3916_v60 = vpack.c.bf16 %v4501_v15, %v4499_v14 }
  0x27   : > { %3302 = vmatprep.mubr.msk.f32.mxu0 %vm4397_vm0, %v4398_v8  ;;  %3911 = vmatpush3.bf16.msra.mxu0 %v3910_v63  ;;  %v4652_v63 = vand.u32 4294901760, %v359_v59  ;;  %v516_v4 = vsub.f32 %v4632_v48, %v515_v56  ;;  %v525_v7 = vand.u32 4294901760, %v4646_v58  ;;  %v4686_v42 = vsub.f32 %v362_v0, %v4667_v20 }
  0x28   : > { %3912 = vmatprep.subr.bf16.mxu0 %v4396_v3 }
  0x29   : > { %v517_v25 = vand.u32 4294901760, %v516_v4  ;;  %v526_v26 = vsub.f32 %v4646_v58, %v525_v7 }
  0x2a   : > { %3303 = vmatmul.mubr.f32.gmra.mrb[4].mxu0 %v457_v2  ;;  %v507_v2 = vand.u32 4294901760, %v506_v55 }
  0x2b   : > { %3305 = vmatprep.mubr.msk.f32.mxu0 %vm4397_vm0, %v4398_v8  ;;  %v527_v39 = vand.u32 4294901760, %v526_v26 }
  0x2e   : > { %3306 = vmatmul.mubr.f32.gmra.mrb[6].mxu0 %v467_v19  ;;  %v4665_v19 = vsub.f32 %v359_v59, %v4652_v63  ;;  %v3913_v59 = vpack.c.bf16 %v4493_v12, %v4491_v11  ;;  %v3928_v11 = vpack.c.bf16 %v587_v23, %v580_v22  ;;  %v1431_v12 = vld [vmem:[%s5913_s3 + $0x8] sm:$0xff]  ;;  %v1432_v22 = vld [vmem:[%s5913_s3 + $0x10] sm:$0xff]  ;;  %v1433_v23 = vld [vmem:[%s5913_s3 + $0x18] sm:$0xff] }
  0x2f   : > { %3308 = vmatprep.mubr.msk.f32.mxu0 %vm4397_vm0, %v4398_v8  ;;  %v1489_v14 = vand.u32 4294901760, %v1431_v12 }
  0x30   : > { %v545_v41 = vand.u32 4294901760, %v4665_v19 }
  0x32   : > { %3309 = vmatmul.mubr.f32.gmra.mrb[8].mxu0 %v477_v28  ;;  %v535_v28 = vand.u32 4294901760, %v4660_v9  ;;  %v546_v17 = vsub.f32 %v4665_v19, %v545_v41 }
  0x33   : > { %3311 = vmatprep.mubr.msk.f32.mxu0 %vm4397_vm0, %v4398_v8 }
  0x34   : > { %v536_v40 = vsub.f32 %v4660_v9, %v535_v28  ;;  %v547_v52 = vand.u32 4294901760, %v546_v17 }
  0x36   : > { %3312 = vmatmul.mubr.f32.gmra.mrb[10].mxu0 %v487_v43  ;;  %v537_v16 = vand.u32 4294901760, %v536_v40  ;;  %v555_v43 = vand.u32 4294901760, %v4686_v42 }
  0x37   : > { %3314 = vmatprep.mubr.msk.f32.mxu0 %vm4397_vm0, %v4398_v8 }
  0x3a   : > { %3315 = vmatmul.mubr.f32.gmra.mrb[12].mxu0 %v497_v53  ;;  %v556_v53 = vsub.f32 %v4686_v42, %v555_v43 }
  0x3b   : > { %3317 = vmatprep.mubr.msk.f32.mxu0 %vm4397_vm0, %v4398_v8 }
  0x3c   : > { %v557_v55 = vand.u32 4294901760, %v556_v53 }
  0x3e   : > { %3318 = vmatmul.mubr.f32.gmra.mrb[14].mxu0 %v507_v2 }
  0x3f   : > { %3320 = vmatprep.mubr.msk.f32.mxu0 %vm4397_vm0, %v4398_v8 }
  0x42   : > { %3321 = vmatmul.mubr.f32.gmra.mrb[16].mxu0 %v517_v25 }
  0x43   : > { %3323 = vmatprep.mubr.msk.f32.mxu0 %vm4397_vm0, %v4398_v8 }
  0x46   : > { %3324 = vmatmul.mubr.f32.gmra.mrb[18].mxu0 %v527_v39 }
  0x47   : > { %3326 = vmatprep.mubr.msk.f32.mxu0 %vm4397_vm0, %v4398_v8 }
  0x4a   : > { %3327 = vmatmul.mubr.f32.gmra.mrb[20].mxu0 %v537_v16 }
  0x4b   : > { %3329 = vmatprep.mubr.msk.f32.mxu0 %vm4397_vm0, %v4398_v8 }
  0x4e   : > { %3330 = vmatmul.mubr.f32.gmra.mrb[22].mxu0 %v547_v52 }
  0x4f   : > { %3332 = vmatprep.mubr.msk.f32.mxu0 %vm4397_vm0, %v4398_v8 }
  0x52   : > { %3333 = vmatmul.mubr.f32.gmra.mrb[24].mxu0 %v557_v55 }
  0x53   : > { %3343 = vmatprep.mubr.msk.f32.mxu0 %vm4397_vm0, %v4398_v8 }
  0x56   : > { %3344 = vmatmul.mubr.f32.vlgmr.msra.gmra.mrb[0].mxu0 %v4530_v30 }
  0x57   : > { %3914 = vmatpush3.bf16.msra.mxu0 %v3913_v59  ;;  %3346 = vmatprep.mubr.msk.f32.mxu0 %vm4397_vm0, %v4398_v8 }
  0x58   : > { %3915 = vmatprep.subr.bf16.mxu0 %v4396_v3 }
  0x5a   : > { %3347 = vmatmul.mubr.f32.gmra.mrb[2].mxu0 %v4532_v31 }
  0x5b   : > { %3349 = vmatprep.mubr.msk.f32.mxu0 %vm4397_vm0, %v4398_v8  ;;  %3917 = vmatpush3.bf16.msra.mxu0 %v3916_v60  ;;  %v5048_v60 = vld [vmem:[%s5912_s2] ss:$0 sm:$0xff] }
  0x5c   : > { %3918 = vmatprep.subr.bf16.mxu0 %v4396_v3 }
  0x5e   : > { %3350 = vmatmul.mubr.f32.gmra.mrb[4].mxu0 %v4534_v32 }
  0x5f   : > { %3352 = vmatprep.mubr.msk.f32.mxu0 %vm4397_vm0, %v4398_v8 }
  0x62   : > { %3353 = vmatmul.mubr.f32.gmra.mrb[6].mxu0 %v4547_v38 }
  0x63   : > { %3355 = vmatprep.mubr.msk.f32.mxu0 %vm4397_vm0, %v4398_v8 }
  0x66   : > { %3356 = vmatmul.mubr.f32.gmra.mrb[8].mxu0 %v4558_v46 }
  0x67   : > { %3358 = vmatprep.mubr.msk.f32.mxu0 %vm4397_vm0, %v4398_v8 }
  0x6a   : > { %3359 = vmatmul.mubr.f32.gmra.mrb[10].mxu0 %v4572_v57 }
  0x6b   : > { %3361 = vmatprep.mubr.msk.f32.mxu0 %vm4397_vm0, %v4398_v8 }
  0x6e   : > { %3362 = vmatmul.mubr.f32.gmra.mrb[12].mxu0 %v4586_v1 }
  0x6f   : > { %3364 = vmatprep.mubr.msk.f32.mxu0 %vm4397_vm0, %v4398_v8 }
  0x72   : > { %3365 = vmatmul.mubr.f32.gmra.mrb[14].mxu0 %v4607_v24 }
  0x73   : > { %3367 = vmatprep.mubr.msk.f32.mxu0 %vm4397_vm0, %v4398_v8 }
  0x76   : > { %3368 = vmatmul.mubr.f32.gmra.mrb[16].mxu0 %v4620_v34 }
  0x77   : > { %3370 = vmatprep.mubr.msk.f32.mxu0 %vm4397_vm0, %v4398_v8 }
  0x7a   : > { %3371 = vmatmul.mubr.f32.gmra.mrb[18].mxu0 %v4634_v49 }
  0x7b   : > { %3373 = vmatprep.mubr.msk.f32.mxu0 %vm4397_vm0, %v4398_v8 }
  0x7e   : > { %3374 = vmatmul.mubr.f32.gmra.mrb[20].mxu0 %v4639_v54 }
  0x7f   : > { %3376 = vmatprep.mubr.msk.f32.mxu0 %vm4397_vm0, %v4398_v8 }
  0x82   : > { %3377 = vmatmul.mubr.f32.gmra.mrb[22].mxu0 %v4652_v63 }
  0x83   : > { %3379 = vmatprep.mubr.msk.f32.mxu0 %vm4397_vm0, %v4398_v8 }
  0x86   : > { %3380 = vmatmul.mubr.f32.gmra.mrb[24].mxu0 %v4667_v20 }
  0x87   : > { %3390 = vmatprep.mubr.msk.f32.mxu0 %vm4397_vm0, %v4398_v8 }
  0x8a   : > { %3391 = vmatmul.mubr.f32.vlgmr.msra.gmra.mrb[0].mxu0 %v4539_v35  ;;  %v1434_v35 = vld [vmem:[%s5913_s3 + $0x20] sm:$0xff] }
  0x8b   : > { %3920 = vmatpush3.bf16.msra.mxu0 %v4489_v10  ;;  %3393 = vmatprep.mubr.msk.f32.mxu0 %vm4397_vm0, %v4398_v8 }
  0x8c   : > { %3921 = vmatprep.subr.bf16.mxu0 %v4396_v3 }
  0x8e   : > { %3394 = vmatmul.mubr.f32.gmra.mrb[2].mxu0 %v4542_v36  ;;  %v1435_v36 = vld [vmem:[%s5913_s3 + $0x28] sm:$0xff] }
  0x8f   : > { %3396 = vmatprep.mubr.msk.f32.mxu0 %vm4397_vm0, %v4398_v8  ;;  %3923 = vmatpush3.bf16.msra.mxu0 %v4497_v13 }
  0x90   : > { %3924 = vmatprep.subr.bf16.mxu0 %v4396_v3 }
  0x92   : > { %3397 = vmatmul.mubr.f32.gmra.mrb[4].mxu0 %v4545_v37  ;;  %v1498_v37 = vand.u32 4294901760, %v1434_v35 }
  0x93   : > { %3399 = vmatprep.mubr.msk.f32.mxu0 %vm4397_vm0, %v4398_v8 }
  0x96   : > { %3400 = vmatmul.mubr.f32.gmra.mrb[6].mxu0 %v4569_v51 }
  0x97   : > { %3402 = vmatprep.mubr.msk.f32.mxu0 %vm4397_vm0, %v4398_v8 }
  0x9a   : > { %3403 = vmatmul.mubr.f32.gmra.mrb[8].mxu0 %v4580_v62  ;;  %v4983_v62 = vsub.f32 %v1431_v12, %v1489_v14 }
  0x9b   : > { %3405 = vmatprep.mubr.msk.f32.mxu0 %vm4397_vm0, %v4398_v8 }
  0x9e   : > { %3406 = vmatmul.mubr.f32.gmra.mrb[10].mxu0 %v4593_v6  ;;  %v4989_v6 = vsub.f32 %v1434_v35, %v1498_v37 }
  0x9f   : > { %3408 = vmatprep.mubr.msk.f32.mxu0 %vm4397_vm0, %v4398_v8 }
  0xa2   : > { %3409 = vmatmul.mubr.f32.gmra.mrb[12].mxu0 %v4601_v18 }
  0xa3   : > { %3411 = vmatprep.mubr.msk.f32.mxu0 %vm4397_vm0, %v4398_v8 }
  0xa6   : > { %3412 = vmatmul.mubr.f32.gmra.mrb[14].mxu0 %v4618_v33  ;;  %v5931_v33 = vand.u32 4294901760, %v4983_v62 }
  0xa7   : > { %3414 = vmatprep.mubr.msk.f32.mxu0 %vm4397_vm0, %v4398_v8 }
  0xaa   : > { %3415 = vmatmul.mubr.f32.gmra.mrb[16].mxu0 %v4632_v48 }
  0xab   : > { %3417 = vmatprep.mubr.msk.f32.mxu0 %vm4397_vm0, %v4398_v8 }
  0xae   : > { %3418 = vmatmul.mubr.f32.gmra.mrb[18].mxu0 %v4646_v58 }
  0xaf   : > { %3420 = vmatprep.mubr.msk.f32.mxu0 %vm4397_vm0, %v4398_v8 }
  0xb2   : > { %3421 = vmatmul.mubr.f32.gmra.mrb[20].mxu0 %v4660_v9 }
  0xb3   : > { %3423 = vmatprep.mubr.msk.f32.mxu0 %vm4397_vm0, %v4398_v8 }
  0xb6   : > { %3424 = vmatmul.mubr.f32.gmra.mrb[22].mxu0 %v4665_v19 }
  0xb7   : > { %3426 = vmatprep.mubr.msk.f32.mxu0 %vm4397_vm0, %v4398_v8 }
  0xba   : > { %3427 = vmatmul.mubr.f32.gmra.mrb[24].mxu0 %v4686_v42 }
  0xbb   : > { %3437 = vmatprep.mubr.msk.f32.mxu0 %vm4397_vm0, %v4398_v8 }
  0xbe   : > { %3438 = vmatmul.mubr.f32.vlgmr.msra.gmra.mrb[0].mxu0 %v435_v44 }
  0xbf   : > { %3926 = vmatpush3.bf16.msra.mxu0 %v4677_v29  ;;  %3440 = vmatprep.mubr.msk.f32.mxu0 %vm4397_vm0, %v4398_v8 }
  0xc0   : > { %3927 = vmatprep.subr.bf16.mxu0 %v4396_v3 }
  0xc2   : > { %3441 = vmatmul.mubr.f32.gmra.mrb[2].mxu0 %v445_v45  ;;  %v1436_v45 = vld [vmem:[%s5913_s3 + $0x30] sm:$0xff] }
  0xc3   : > { %3443 = vmatprep.mubr.msk.f32.mxu0 %vm4397_vm0, %v4398_v8  ;;  %3929 = vmatpush3.bf16.msra.mxu0 %v3928_v11 }
  0xc4   : > { %3930 = vmatprep.subr.bf16.mxu0 %v4396_v3 }
  0xc6   : > { %3444 = vmatmul.mubr.f32.gmra.mrb[4].mxu0 %v455_v50  ;;  %v1504_v50 = vand.u32 4294901760, %v1436_v45 }
  0xc7   : > { %3446 = vmatprep.mubr.msk.f32.mxu0 %vm4397_vm0, %v4398_v8 }
  0xca   : > { %3447 = vmatmul.mubr.f32.gmra.mrb[6].mxu0 %v465_v61 }
  0xcb   : > { %3449 = vmatprep.mubr.msk.f32.mxu0 %vm4397_vm0, %v4398_v8 }
  0xce   : > { %3450 = vmatmul.mubr.f32.gmra.mrb[8].mxu0 %v475_v5 }
  0xcf   : > { %3452 = vmatprep.mubr.msk.f32.mxu0 %vm4397_vm0, %v4398_v8 }
  0xd2   : > { %3453 = vmatmul.mubr.f32.gmra.mrb[10].mxu0 %v485_v21  ;;  %v4993_v21 = vsub.f32 %v1436_v45, %v1504_v50 }
  0xd3   : > { %3455 = vmatprep.mubr.msk.f32.mxu0 %vm4397_vm0, %v4398_v8 }
  0xd4   : > { %v5919_v26 = vand.u32 4294901760, %v4993_v21 }
  0xd6   : > { %3456 = vmatmul.mubr.f32.gmra.mrb[12].mxu0 %v495_v27  ;;  %v1734_v40 = vsub.f32 %v4993_v21, %v5919_v26 }
  0xd7   : > { %3458 = vmatprep.mubr.msk.f32.mxu0 %vm4397_vm0, %v4398_v8 }
  0xd8   : > { %v1735_v16 = vand.u32 4294901760, %v1734_v40 }
  0xda   : > { %3459 = vmatmul.mubr.f32.gmra.mrb[14].mxu0 %v505_v47  ;;  %v1699_v47 = vsub.f32 %v4983_v62, %v5931_v33 }
  0xdb   : > { %3461 = vmatprep.mubr.msk.f32.mxu0 %vm4397_vm0, %v4398_v8 }
  0xde   : > { %3462 = vmatmul.mubr.f32.gmra.mrb[16].mxu0 %v515_v56 }
  0xdf   : > { %3464 = vmatprep.mubr.msk.f32.mxu0 %vm4397_vm0, %v4398_v8 }
  0xe2   : > { %3465 = vmatmul.mubr.f32.gmra.mrb[18].mxu0 %v525_v7  ;;  %v5923_v7 = vand.u32 4294901760, %v4989_v6 }
  0xe3   : > { %3467 = vmatprep.mubr.msk.f32.mxu0 %vm4397_vm0, %v4398_v8 }
  0xe6   : > { %3468 = vmatmul.mubr.f32.gmra.mrb[20].mxu0 %v535_v28 }
  0xe7   : > { %3470 = vmatprep.mubr.msk.f32.mxu0 %vm4397_vm0, %v4398_v8 }
  0xea   : > { %3471 = vmatmul.mubr.f32.gmra.mrb[22].mxu0 %v545_v41 }
  0xeb   : > { %3473 = vmatprep.mubr.msk.f32.mxu0 %vm4397_vm0, %v4398_v8 }
  0xee   : > { %3474 = vmatmul.mubr.f32.gmra.mrb[24].mxu0 %v555_v43 }
  0xef   : > { %3484 = vmatprep.mubr.msk.f32.mxu0 %vm4397_vm0, %v4398_v8 }
  0xf2   : > { %3485 = vmatmul.mubr.f32.vlgmr.msra.gmra.mrb[0].mxu0 %v4530_v30 }
  0xf3   : > { %3932 = vmatpush3.bf16.msra.mxu0 %v4489_v10  ;;  %3487 = vmatprep.mubr.msk.f32.mxu0 %vm4397_vm0, %v4398_v8  ;;  %v1430_v10 = vld [vmem:[%s5913_s3] sm:$0xff] }
  0xf4   : > { %3933 = vmatprep.subr.bf16.mxu0 %v4396_v3 }
  0xf6   : > { %3488 = vmatmul.mubr.f32.gmra.mrb[2].mxu0 %v4532_v31 }
  0xf7   : > { %3490 = vmatprep.mubr.msk.f32.mxu0 %vm4397_vm0, %v4398_v8  ;;  %3935 = vmatpush3.bf16.msra.mxu0 %v4497_v13  ;;  %v1486_v13 = vand.u32 4294901760, %v1430_v10 }
  0xf8   : > { %3936 = vmatprep.subr.bf16.mxu0 %v4396_v3 }
  0xf9   : > { %v4940_v15 = vpack.c.bf16 %v1489_v14, %v1486_v13  ;;  %v4981_v61 = vsub.f32 %v1430_v10, %v1486_v13 }
  0xfa   : > { %3491 = vmatmul.mubr.f32.gmra.mrb[4].mxu0 %v4534_v32 }
  0xfb   : > { %3493 = vmatprep.mubr.msk.f32.mxu0 %vm4397_vm0, %v4398_v8  ;;  %4012 = vmatpush3.bf16.msra.mxu1 %v4940_v15  ;;  %v5933_v27 = vand.u32 4294901760, %v4981_v61  ;;  %v3961_v52 = vpack.c.bf16 %v4983_v62, %v4981_v61 }
  0xfc   : > { %4009 = vmatprep.subr.bf16.mxu1 %v4396_v3 }
  0xfe   : > { %3494 = vmatmul.mubr.f32.gmra.mrb[6].mxu0 %v4547_v38 }
  0xff   : > { %3496 = vmatprep.mubr.msk.f32.mxu0 %vm4397_vm0, %v4398_v8 }
 0x102   : > { %3497 = vmatmul.mubr.f32.gmra.mrb[8].mxu0 %v4558_v46 }
 0x103   : > { %3499 = vmatprep.mubr.msk.f32.mxu0 %vm4397_vm0, %v4398_v8 }
 0x106   : > { %3500 = vmatmul.mubr.f32.gmra.mrb[10].mxu0 %v4572_v57 }
 0x107   : > { %3502 = vmatprep.mubr.msk.f32.mxu0 %vm4397_vm0, %v4398_v8 }
 0x10a   : > { %3503 = vmatmul.mubr.f32.gmra.mrb[12].mxu0 %v4586_v1 }
 0x10b   : > { %3505 = vmatprep.mubr.msk.f32.mxu0 %vm4397_vm0, %v4398_v8 }
 0x10e   : > { %3506 = vmatmul.mubr.f32.gmra.mrb[14].mxu0 %v4607_v24 }
 0x10f   : > { %3508 = vmatprep.mubr.msk.f32.mxu0 %vm4397_vm0, %v4398_v8 }
 0x112   : > { %3509 = vmatmul.mubr.f32.gmra.mrb[16].mxu0 %v4620_v34 }
 0x113   : > { %3511 = vmatprep.mubr.msk.f32.mxu0 %vm4397_vm0, %v4398_v8 }
 0x116   : > { %3512 = vmatmul.mubr.f32.gmra.mrb[18].mxu0 %v4634_v49 }
 0x117   : > { %3514 = vmatprep.mubr.msk.f32.mxu0 %vm4397_vm0, %v4398_v8 }
 0x11a   : > { %3515 = vmatmul.mubr.f32.gmra.mrb[20].mxu0 %v4639_v54 }
 0x11b   : > { %3517 = vmatprep.mubr.msk.f32.mxu0 %vm4397_vm0, %v4398_v8 }
 0x11e   : > { %3518 = vmatmul.mubr.f32.gmra.mrb[22].mxu0 %v4652_v63 }
 0x11f   : > { %3520 = vmatprep.mubr.msk.f32.mxu0 %vm4397_vm0, %v4398_v8 }
 0x122   : > { %3521 = vmatmul.mubr.f32.gmra.mrb[24].mxu0 %v4667_v20 }
 0x123   : > { %3531 = vmatprep.mubr.msk.f32.mxu0 %vm4397_vm0, %v4398_v8 }
 0x126   : > { %3532 = vmatmul.mubr.f32.vlgmr.msra.gmra.mrb[0].mxu0 %v4530_v30  ;;  %v1492_v30 = vand.u32 4294901760, %v1432_v22 }
 0x127   : > { %3534 = vmatprep.mubr.msk.f32.mxu0 %vm4397_vm0, %v4398_v8  ;;  %3938 = vmatpush3.bf16.msra.mxu0 %v4940_v15 }
 0x128   : > { %3939 = vmatprep.subr.bf16.mxu0 %v4396_v3 }
 0x12a   : > { %3535 = vmatmul.mubr.f32.gmra.mrb[2].mxu0 %v4532_v31  ;;  %v1495_v31 = vand.u32 4294901760, %v1433_v23 }
 0x12b   : > { %3537 = vmatprep.mubr.msk.f32.mxu0 %vm4397_vm0, %v4398_v8 }
 0x12c   : > { %v4987_v5 = vsub.f32 %v1433_v23, %v1495_v31 }
 0x12e   : > { %3538 = vmatmul.mubr.f32.gmra.mrb[4].mxu0 %v4534_v32  ;;  %v4952_v32 = vpack.c.bf16 %v1495_v31, %v1492_v30  ;;  %v5926_v58 = vand.u32 4294901760, %v4987_v5 }
 0x12f   : > { %3540 = vmatprep.mubr.msk.f32.mxu0 %vm4397_vm0, %v4398_v8 }
 0x130   : > { %3941 = vmatpush3.bf16.msra.mxu0 %v4952_v32  ;;  %4013 = vmatpush3.bf16.msra.mxu1 %v4952_v32  ;;  %v1713_v0 = vsub.f32 %v4987_v5, %v5926_v58 }
 0x131   : > { %3942 = vmatprep.subr.bf16.mxu0 %v4396_v3  ;;  %4010 = vmatprep.subr.bf16.mxu1 %v4396_v3 }
 0x132   : > { %3541 = vmatmul.mubr.f32.gmra.mrb[6].mxu0 %v4547_v38  ;;  %v1501_v38 = vand.u32 4294901760, %v1435_v36  ;;  %v1714_v4 = vand.u32 4294901760, %v1713_v0 }
 0x133   : > { %3543 = vmatprep.mubr.msk.f32.mxu0 %vm4397_vm0, %v4398_v8 }
 0x134   : > { %v4964_v44 = vpack.c.bf16 %v1501_v38, %v1498_v37  ;;  %v4991_v18 = vsub.f32 %v1435_v36, %v1501_v38 }
 0x136   : > { %3544 = vmatmul.mubr.f32.gmra.mrb[8].mxu0 %v4558_v46  ;;  %v1437_v46 = vld [vmem:[%s5913_s3 + $0x38] sm:$0xff]  ;;  %4014 = vmatpush3.bf16.msra.mxu1 %v4964_v44  ;;  %v5922_v9 = vand.u32 4294901760, %v4991_v18 }
 0x137   : > { %3546 = vmatprep.mubr.msk.f32.mxu0 %vm4397_vm0, %v4398_v8  ;;  %3944 = vmatpush3.bf16.msra.mxu0 %v4964_v44  ;;  %v1507_v51 = vand.u32 4294901760, %v1437_v46 }
 0x138   : > { %3945 = vmatprep.subr.bf16.mxu0 %v4396_v3  ;;  %4011 = vmatprep.subr.bf16.mxu1 %v4396_v3  ;;  %v1727_v25 = vsub.f32 %v4991_v18, %v5922_v9 }
 0x13a   : > { %3547 = vmatmul.mubr.f32.gmra.mrb[10].mxu0 %v4572_v57  ;;  %v4976_v57 = vpack.c.bf16 %v1507_v51, %v1504_v50  ;;  %v1728_v39 = vand.u32 4294901760, %v1727_v25 }
 0x13b   : > { %3549 = vmatprep.mubr.msk.f32.mxu0 %vm4397_vm0, %v4398_v8 }
 0x13c   : > { %3947 = vmatpush3.bf16.msra.mxu0 %v4976_v57  ;;  %4015 = vmatpush3.bf16.msra.mxu1 %v4976_v57 }
 0x13d   : > { %3948 = vmatprep.subr.bf16.mxu1 %v4396_v3 }
 0x13e   : > { %3550 = vmatmul.mubr.f32.gmra.mrb[12].mxu0 %v4586_v1  ;;  %v4985_v1 = vsub.f32 %v1432_v22, %v1492_v30 }
 0x13f   : > { %3552 = vmatprep.mubr.msk.f32.mxu0 %vm4397_vm0, %v4398_v8 }
 0x140   : > { %v5928_v56 = vand.u32 4294901760, %v4985_v1  ;;  %v3964_v53 = vpack.c.bf16 %v4987_v5, %v4985_v1 }
 0x142   : > { %3553 = vmatmul.mubr.f32.gmra.mrb[14].mxu0 %v4607_v24  ;;  %v4995_v24 = vsub.f32 %v1437_v46, %v1507_v51 }
 0x143   : > { %3555 = vmatprep.mubr.msk.f32.mxu0 %vm4397_vm0, %v4398_v8 }
 0x144   : > { %v5918_v28 = vand.u32 4294901760, %v4995_v24 }
 0x146   : > { %3556 = vmatmul.mubr.f32.gmra.mrb[16].mxu0 %v4620_v34  ;;  %v1692_v34 = vsub.f32 %v4981_v61, %v5933_v27  ;;  %v1741_v41 = vsub.f32 %v4995_v24, %v5918_v28 }
 0x147   : > { %3558 = vmatprep.mubr.msk.f32.mxu0 %vm4397_vm0, %v4398_v8 }
 0x148   : > { %v1693_v48 = vand.u32 4294901760, %v1692_v34  ;;  %v1742_v17 = vand.u32 4294901760, %v1741_v41 }
 0x14a   : > { %3559 = vmatmul.mubr.f32.gmra.mrb[18].mxu0 %v4634_v49  ;;  %v1700_v49 = vand.u32 4294901760, %v1699_v47  ;;  %v5035_v43 = vpack.c.bf16 %v1742_v17, %v1735_v16 }
 0x14b   : > { %3561 = vmatprep.mubr.msk.f32.mxu0 %vm4397_vm0, %v4398_v8 }
 0x14e   : > { %3562 = vmatmul.mubr.f32.gmra.mrb[20].mxu0 %v4639_v54  ;;  %v5005_v54 = vpack.c.bf16 %v1700_v49, %v1693_v48 }
 0x14f   : > { %3564 = vmatprep.mubr.msk.f32.mxu0 %vm4397_vm0, %v4398_v8 }
 0x152   : > { %3565 = vmatmul.mubr.f32.gmra.mrb[22].mxu0 %v4652_v63  ;;  %v1706_v63 = vsub.f32 %v4985_v1, %v5928_v56 }
 0x153   : > { %3567 = vmatprep.mubr.msk.f32.mxu0 %vm4397_vm0, %v4398_v8 }
 0x154   : > { %v1707_v2 = vand.u32 4294901760, %v1706_v63 }
 0x156   : > { %3568 = vmatmul.mubr.f32.gmra.mrb[24].mxu0 %v4667_v20  ;;  %v5017_v19 = vpack.c.bf16 %v1714_v4, %v1707_v2  ;;  %v1720_v20 = vsub.f32 %v4989_v6, %v5923_v7 }
 0x157   : > { %3586 = vmatprep.mubr.msk.f32.mxu0 %vm4397_vm0, %v4398_v8 }
 0x158   : > { %v1721_v29 = vand.u32 4294901760, %v1720_v20 }
 0x15a   : > { %v5033_v42 = vpack.c.bf16 %v1728_v39, %v1721_v29 }
 0x1f9   : > { %v1289_v11 = vpop.f32.mrb[0].mxu0 }
 0x1fa   : > { %v5051_v10 = vadd.f32 %v5048_v60, %v1289_v11  ;;  %v3533_v12 = vpop.f32.mrb[1].mxu0 }
 0x1fc   : > { %v1378_v13 = vmul.f32 0.70710677, %v5051_v10  ;;  %v1365_v34 = vmul.f32 0.5, %v5051_v10 }
 0x1fd   : > { %v1295_v14 = vpop.f32.mrb[2].mxu0 }
 0x1fe   : > { %4252 = verf.f32 %v1378_v13  ;;  %v5055_v22 = vadd.f32 %v5048_v60, %v1295_v14  ;;  %v3536_v23 = vpop.f32.mrb[3].mxu0 }
 0x200   : > { %v1379_v30 = vmul.f32 0.70710677, %v5055_v22  ;;  %v1366_v25 = vmul.f32 0.5, %v5055_v22 }
 0x201   : > { %v1301_v31 = vpop.f32.mrb[4].mxu0 }
 0x202   : > { %4254 = verf.f32 %v1379_v30  ;;  %v5059_v35 = vadd.f32 %v5048_v60, %v1301_v31  ;;  %v3539_v36 = vpop.f32.mrb[5].mxu0 }
 0x204   : > { %v1380_v37 = vmul.f32 0.70710677, %v5059_v35  ;;  %v1367_v23 = vmul.f32 0.5, %v5059_v35 }
 0x205   : > { %v1307_v38 = vpop.f32.mrb[6].mxu0 }
 0x206   : > { %4256 = verf.f32 %v1380_v37  ;;  %v5063_v45 = vadd.f32 %v5048_v60, %v1307_v38  ;;  %v3542_v46 = vpop.f32.mrb[7].mxu0 }
 0x208   : > { %v4253_v50 = vpop.eup %4252  ;;  %v1381_v51 = vmul.f32 0.70710677, %v5063_v45 }
 0x209   : > { %v1404_v47 = vadd.f32 1.0, %v4253_v50  ;;  %v1313_v48 = vpop.f32.mrb[8].mxu0 }
 0x20a   : > { %4258 = verf.f32 %v1381_v51  ;;  %v5068_v49 = vadd.f32 %v5048_v60, %v1313_v48  ;;  %v3545_v63 = vpop.f32.mrb[9].mxu0 }
 0x20b   : > { %v1417_v0 = vmul.f32 %v1404_v47, %v1365_v34 }
 0x20c   : > { %v4255_v2 = vpop.eup %4254  ;;  %v1382_v4 = vmul.f32 0.70710677, %v5068_v49 }
 0x20d   : > { %v1447_v20 = vsel %vm1445_vm2, %v1417_v0, 0  ;;  %v1405_v29 = vadd.f32 1.0, %v4255_v2  ;;  %v1319_v39 = vpop.f32.mrb[10].mxu0  ;;  %v1368_v0 = vmul.f32 0.5, %v5063_v45 }
 0x20e   : > { %v5073_v40 = vand.u32 4294901760, %v1447_v20  ;;  %4260 = verf.f32 %v1382_v4  ;;  %v5076_v41 = vadd.f32 %v5048_v60, %v1319_v39  ;;  %v3548_v16 = vpop.f32.mrb[11].mxu0 }
 0x20f   : > { %v1418_v17 = vmul.f32 %v1405_v29, %v1366_v25 }
 0x210   : > { %v4257_v11 = vpop.eup %4256  ;;  %v5079_v12 = vsub.f32 %v1447_v20, %v5073_v40  ;;  %v1383_v13 = vmul.f32 0.70710677, %v5076_v41 }
 0x211   : > { %v1450_v14 = vsel %vm1445_vm2, %v1418_v17, 0  ;;  %v1406_v30 = vadd.f32 1.0, %v4257_v11  ;;  %v1325_v31 = vpop.f32.mrb[12].mxu0 }
 0x212   : > { %v5084_v36 = vand.u32 4294901760, %v1450_v14  ;;  %4262 = verf.f32 %v1383_v13  ;;  %v5087_v37 = vadd.f32 %v5048_v60, %v1325_v31  ;;  %v3551_v38 = vpop.f32.mrb[13].mxu0  ;;  %v5930_v46 = vand.u32 4294901760, %v5079_v12 }
 0x213   : > { %v1419_v50 = vmul.f32 %v1406_v30, %v1367_v23  ;;  %v1369_v30 = vmul.f32 0.5, %v5068_v49 }
 0x214   : > { %v4259_v51 = vpop.eup %4258  ;;  %v1384_v34 = vmul.f32 0.70710677, %v5087_v37  ;;  %v1561_v47 = vsub.f32 %v5079_v12, %v5930_v46  ;;  %v5095_v48 = vsub.f32 %v1450_v14, %v5084_v36 }
 0x215   : > { %v1453_v63 = vsel %vm1445_vm2, %v1419_v50, 0  ;;  %v1407_v2 = vadd.f32 1.0, %v4259_v51  ;;  %v1331_v4 = vpop.f32.mrb[14].mxu0 }
 0x216   : > { %v5099_v20 = vand.u32 4294901760, %v1453_v63  ;;  %4264 = verf.f32 %v1384_v34  ;;  %v5102_v25 = vadd.f32 %v5048_v60, %v1331_v4  ;;  %v3554_v29 = vpop.f32.mrb[15].mxu0  ;;  %v1562_v39 = vand.u32 4294901760, %v1561_v47 }
 0x217   : > { %v1420_v16 = vmul.f32 %v1407_v2, %v1368_v0  ;;  %v5925_v17 = vand.u32 4294901760, %v5095_v48 }
 0x218   : > { %v4261_v11 = vpop.eup %4260  ;;  %v1385_v13 = vmul.f32 0.70710677, %v5102_v25  ;;  %3587 = vmatmul.mubr.f32.vlgmr.msra.gmra.mrb[26].mxu0 %v1562_v39  ;;  %v5107_v14 = vsub.f32 %v1453_v63, %v5099_v20  ;;  %v1372_v9 = vmul.f32 0.5, %v5102_v25 }
 0x219   : > { %v1456_v23 = vsel %vm1445_vm2, %v1420_v16, 0  ;;  %v1408_v31 = vadd.f32 1.0, %v4261_v11  ;;  %v1337_v38 = vpop.f32.mrb[16].mxu0  ;;  %v1571_v50 = vsub.f32 %v5095_v48, %v5925_v17 }
 0x21a   : > { %v5114_v51 = vand.u32 4294901760, %v1456_v23  ;;  %4266 = verf.f32 %v1385_v13  ;;  %v5117_v34 = vadd.f32 %v5048_v60, %v1337_v38  ;;  %v3557_v47 = vpop.f32.mrb[17].mxu0  ;;  %v5920_v63 = vand.u32 4294901760, %v5107_v14 }
 0x21b   : > { %v1421_v0 = vmul.f32 %v1408_v31, %v1369_v30  ;;  %v1572_v2 = vand.u32 4294901760, %v1571_v50  ;;  %v1370_v13 = vmul.f32 0.5, %v5076_v41 }
 0x21c   : > { %v4263_v4 = vpop.eup %4262  ;;  %v1386_v29 = vmul.f32 0.70710677, %v5117_v34  ;;  %v1581_v39 = vsub.f32 %v5107_v14, %v5920_v63  ;;  %v5125_v16 = vsub.f32 %v1456_v23, %v5114_v51 }
 0x21d   : > { %v1459_v11 = vsel %vm1445_vm2, %v1421_v0, 0  ;;  %v1409_v38 = vadd.f32 1.0, %v4263_v4  ;;  %3590 = vmatmul.mubr.f32.vlgmr.msra.gmra.mrb[0].mxu1 %v1572_v2  ;;  %v1343_v47 = vpop.f32.mrb[18].mxu0 }
 0x21e   : > { %v5129_v28 = vand.u32 4294901760, %v1459_v11  ;;  %4268 = verf.f32 %v1386_v29  ;;  %3950 = vmatpush3.bf16.msra.mxu1 %v5005_v54  ;;  %v5133_v30 = vadd.f32 %v5048_v60, %v1343_v47  ;;  %v3560_v31 = vpop.f32.mrb[19].mxu0  ;;  %3592 = vmatprep.mubr.msk.f32.mxu1 %vm4397_vm0, %v4398_v8  ;;  %v1582_v23 = vand.u32 4294901760, %v1581_v39 }
 0x21f   : > { %v1422_v50 = vmul.f32 %v1409_v38, %v1370_v13  ;;  %v5921_v0 = vand.u32 4294901760, %v5125_v16  ;;  %3951 = vmatprep.subr.bf16.mxu1 %v4396_v3  ;;  %v1371_v47 = vmul.f32 0.5, %v5087_v37 }
 0x220   : > { %v4265_v2 = vpop.eup %4264  ;;  %v1387_v4 = vmul.f32 0.70710677, %v5133_v30  ;;  %v5141_v29 = vsub.f32 %v1459_v11, %v5129_v28 }
 0x221   : > { %v1462_v54 = vsel %vm1445_vm2, %v1422_v50, 0  ;;  %v1410_v31 = vadd.f32 1.0, %v4265_v2  ;;  %3593 = vmatmul.mubr.f32.gmra.mrb[2].mxu1 %v1582_v23  ;;  %v1349_v26 = vpop.f32.mrb[20].mxu0  ;;  %v1591_v39 = vsub.f32 %v5125_v16, %v5921_v0 }
 0x222   : > { %v5148_v13 = vand.u32 4294901760, %v1462_v54  ;;  %4270 = verf.f32 %v1387_v4  ;;  %v5151_v38 = vadd.f32 %v5048_v60, %v1349_v26  ;;  %v3563_v63 = vpop.f32.mrb[21].mxu0  ;;  %3595 = vmatprep.mubr.msk.f32.mxu1 %vm4397_vm0, %v4398_v8  ;;  %v5924_v11 = vand.u32 4294901760, %v5141_v29  ;;  %3953 = vmatpush3.bf16.msra.mxu1 %v5017_v19 }
 0x223   : > { %v1423_v23 = vmul.f32 %v1410_v31, %v1371_v47  ;;  %v1592_v50 = vand.u32 4294901760, %v1591_v39  ;;  %3954 = vmatprep.subr.bf16.mxu1 %v4396_v3 }
 0x224   : > { %v4267_v2 = vpop.eup %4266  ;;  %v1388_v0 = vmul.f32 0.70710677, %v5151_v38  ;;  %v1601_v26 = vsub.f32 %v5141_v29, %v5924_v11  ;;  %v5163_v63 = vsub.f32 %v1462_v54, %v5148_v13 }
 0x225   : > { %v1465_v4 = vsel %vm1445_vm2, %v1423_v23, 0  ;;  %v1411_v7 = vadd.f32 1.0, %v4267_v2  ;;  %3596 = vmatmul.mubr.f32.gmra.mrb[4].mxu1 %v1592_v50  ;;  %v1355_v19 = vpop.f32.mrb[22].mxu0 }
 0x226   : > { %v5167_v47 = vand.u32 4294901760, %v1465_v4  ;;  %4272 = verf.f32 %v1388_v0  ;;  %v5170_v31 = vadd.f32 %v5048_v60, %v1355_v19  ;;  %v3566_v39 = vpop.f32.mrb[23].mxu0  ;;  %3598 = vmatprep.mubr.msk.f32.mxu1 %vm4397_vm0, %v4398_v8  ;;  %v1602_v11 = vand.u32 4294901760, %v1601_v26  ;;  %3956 = vmatpush3.bf16.msra.mxu1 %v5033_v42 }
 0x227   : > { %v1424_v54 = vmul.f32 %v1411_v7, %v1372_v9  ;;  %v5927_v23 = vand.u32 4294901760, %v5163_v63  ;;  %3957 = vmatprep.subr.bf16.mxu1 %v4396_v3  ;;  %v1373_v39 = vmul.f32 0.5, %v5117_v34 }
 0x228   : > { %v4269_v50 = vpop.eup %4268  ;;  %v1389_v2 = vmul.f32 0.70710677, %v5170_v31  ;;  %v5179_v0 = vsub.f32 %v1465_v4, %v5167_v47 }
 0x229   : > { %v1468_v19 = vsel %vm1445_vm2, %v1424_v54, 0  ;;  %v1412_v17 = vadd.f32 1.0, %v4269_v50  ;;  %3599 = vmatmul.mubr.f32.gmra.mrb[6].mxu1 %v1602_v11  ;;  %v1361_v26 = vpop.f32.mrb[24].mxu0  ;;  %v1611_v7 = vsub.f32 %v5163_v63, %v5927_v23 }
 0x22a   : > { %v5186_v9 = vand.u32 4294901760, %v1468_v19  ;;  %4274 = verf.f32 %v1389_v2  ;;  %v5189_v42 = vadd.f32 %v5048_v60, %v1361_v26  ;;  %v3569_v58 = vpop.f32.mrb[25].mxu0  ;;  %3601 = vmatprep.mubr.msk.f32.mxu1 %vm4397_vm0, %v4398_v8  ;;  %v5929_v4 = vand.u32 4294901760, %v5179_v0  ;;  %3959 = vmatpush3.bf16.msra.mxu1 %v5035_v43 }
 0x22b   : > { %v1425_v11 = vmul.f32 %v1412_v17, %v1373_v39  ;;  %v1612_v54 = vand.u32 4294901760, %v1611_v7  ;;  %3960 = vmatprep.subr.bf16.mxu1 %v4396_v3  ;;  %v1374_v26 = vmul.f32 0.5, %v5133_v30 }
 0x22c   : > { %v4271_v50 = vpop.eup %4270  ;;  %v1390_v23 = vmul.f32 0.70710677, %v5189_v42  ;;  %v1621_v60 = vsub.f32 %v5179_v0, %v5929_v4  ;;  %v5201_v58 = vsub.f32 %v1468_v19, %v5186_v9 }
 0x22d   : > { %v1471_v2 = vsel %vm1445_vm2, %v1425_v11, 0  ;;  %v1413_v56 = vadd.f32 1.0, %v4271_v50  ;;  %3602 = vmatmul.mubr.f32.gmra.mrb[8].mxu1 %v1612_v54  ;;  %v1375_v50 = vmul.f32 0.5, %v5151_v38 }
 0x22e   : > { %v5205_v43 = vand.u32 4294901760, %v1471_v2  ;;  %4276 = verf.f32 %v1390_v23  ;;  %3604 = vmatprep.mubr.msk.f32.mxu1 %vm4397_vm0, %v4398_v8  ;;  %v1622_v17 = vand.u32 4294901760, %v1621_v60  ;;  %v5932_v39 = vand.u32 4294901760, %v5201_v58 }
 0x22f   : > { %v1426_v7 = vmul.f32 %v1413_v56, %v1374_v26 }
 0x230   : > { %v4273_v4 = vpop.eup %4272  ;;  %v1631_v19 = vsub.f32 %v5201_v58, %v5932_v39  ;;  %v5214_v11 = vsub.f32 %v1471_v2, %v5205_v43 }
 0x231   : > { %v1474_v54 = vsel %vm1445_vm2, %v1426_v7, 0  ;;  %v1414_v23 = vadd.f32 1.0, %v4273_v4  ;;  %3605 = vmatmul.mubr.f32.gmra.mrb[10].mxu1 %v1622_v17  ;;  %v1376_v17 = vmul.f32 0.5, %v5170_v31 }
 0x232   : > { %v5218_v46 = vand.u32 4294901760, %v1474_v54  ;;  %3607 = vmatprep.mubr.msk.f32.mxu1 %vm4397_vm0, %v4398_v8  ;;  %v1632_v56 = vand.u32 4294901760, %v1631_v19  ;;  %v5934_v60 = vand.u32 4294901760, %v5214_v11 }
 0x233   : > { %v1427_v26 = vmul.f32 %v1414_v23, %v1375_v50 }
 0x234   : > { %v4275_v33 = vpop.eup %4274  ;;  %v1641_v2 = vsub.f32 %v5214_v11, %v5934_v60  ;;  %v5227_v7 = vsub.f32 %v1474_v54, %v5218_v46 }
 0x235   : > { %v1477_v4 = vsel %vm1445_vm2, %v1427_v26, 0  ;;  %v1415_v39 = vadd.f32 1.0, %v4275_v33  ;;  %3608 = vmatmul.mubr.f32.gmra.mrb[12].mxu1 %v1632_v56  ;;  %v1377_v56 = vmul.f32 0.5, %v5189_v42 }
 0x236   : > { %v5231_v27 = vand.u32 4294901760, %v1477_v4  ;;  %3610 = vmatprep.mubr.msk.f32.mxu1 %vm4397_vm0, %v4398_v8  ;;  %v1642_v19 = vand.u32 4294901760, %v1641_v2  ;;  %v5935_v50 = vand.u32 4294901760, %v5227_v7 }
 0x237   : > { %v1428_v23 = vmul.f32 %v1415_v39, %v1376_v17 }
 0x238   : > { %v4277_v59 = vpop.eup %4276  ;;  %v1651_v54 = vsub.f32 %v5227_v7, %v5935_v50  ;;  %v5240_v26 = vsub.f32 %v1477_v4, %v5231_v27 }
 0x239   : > { %v1480_v33 = vsel %vm1445_vm2, %v1428_v23, 0  ;;  %v1416_v60 = vadd.f32 1.0, %v4277_v59  ;;  %3611 = vmatmul.mubr.f32.gmra.mrb[14].mxu1 %v1642_v19 }
 0x23a   : > { %v5244_v55 = vand.u32 4294901760, %v1480_v33  ;;  %3613 = vmatprep.mubr.msk.f32.mxu1 %vm4397_vm0, %v4398_v8  ;;  %v1652_v39 = vand.u32 4294901760, %v1651_v54  ;;  %v1660_v2 = vand.u32 4294901760, %v5240_v26 }
 0x23b   : > { %v1429_v17 = vmul.f32 %v1416_v60, %v1377_v56 }
 0x23c   : > { %v1661_v4 = vsub.f32 %v5240_v26, %v1660_v2  ;;  %v5253_v50 = vsub.f32 %v1480_v33, %v5244_v55 }
 0x23d   : > { %v1483_v23 = vsel %vm1445_vm2, %v1429_v17, 0  ;;  %3614 = vmatmul.mubr.f32.gmra.mrb[16].mxu1 %v1652_v39 }
 0x23e   : > { %v5256_v59 = vand.u32 4294901760, %v1483_v23  ;;  %3616 = vmatprep.mubr.msk.f32.mxu1 %vm4397_vm0, %v4398_v8  ;;  %v1662_v19 = vand.u32 4294901760, %v1661_v4  ;;  %v1670_v54 = vand.u32 4294901760, %v5253_v50 }
 0x240   : > { %v1671_v60 = vsub.f32 %v5253_v50, %v1670_v54  ;;  %v5265_v56 = vsub.f32 %v1483_v23, %v5256_v59  ;;  %v5939_v23 = vand.u32 4294901760, %v4981_v61  ;;  %v5945_v61 = vand.u32 4294901760, %v4989_v6 }
 0x241   : > { %3617 = vmatmul.mubr.f32.gmra.mrb[18].mxu1 %v1662_v19  ;;  %v5940_v19 = vand.u32 4294901760, %v4983_v62  ;;  %v5946_v62 = vand.u32 4294901760, %v4991_v18 }
 0x242   : > { %3619 = vmatprep.mubr.msk.f32.mxu1 %vm4397_vm0, %v4398_v8  ;;  %v1672_v33 = vand.u32 4294901760, %v1671_v60  ;;  %v1680_v39 = vand.u32 4294901760, %v5265_v56 }
 0x243   : > { %v3985_v60 = vpack.c.bf16 %v5940_v19, %v5939_v23 }
 0x244   : > { %v1681_v17 = vsub.f32 %v5265_v56, %v1680_v39 }
 0x245   : > { %3620 = vmatmul.mubr.f32.gmra.mrb[20].mxu1 %v1672_v33  ;;  %v5941_v33 = vand.u32 4294901760, %v5079_v12 }
 0x246   : > { %3622 = vmatprep.mubr.msk.f32.mxu1 %vm4397_vm0, %v4398_v8  ;;  %v1682_v4 = vand.u32 4294901760, %v1681_v17  ;;  %v5942_v17 = vand.u32 4294901760, %v4985_v1  ;;  %v5947_v1 = vand.u32 4294901760, %v5107_v14 }
 0x249   : > { %3623 = vmatmul.mubr.f32.gmra.mrb[22].mxu1 %v1682_v4  ;;  %v5943_v4 = vand.u32 4294901760, %v4987_v5  ;;  %v5948_v5 = vand.u32 4294901760, %v4993_v21 }
 0x24a   : > { %3641 = vmatprep.mubr.msk.f32.mxu1 %vm4397_vm0, %v4398_v8 }
 0x24d   : > { %3642 = vmatmul.mubr.f32.vlgmr.msra.gmra.mrb[24].mxu1 %v5073_v40 }
 0x24e   : > { %3962 = vmatpush3.bf16.msra.mxu1 %v3961_v52  ;;  %3644 = vmatprep.mubr.msk.f32.mxu1 %vm4397_vm0, %v4398_v8  ;;  %v5937_v52 = vpack.c.bf16 %v4991_v18, %v4989_v6  ;;  %v5950_v6 = vand.u32 4294901760, %v5125_v16  ;;  %v5951_v18 = vand.u32 4294901760, %v5141_v29 }
 0x24f   : > { %3963 = vmatprep.subr.bf16.mxu1 %v4396_v3 }
 0x251   : > { %3645 = vmatmul.mubr.f32.gmra.mrb[26].mxu1 %v5084_v36 }
 0x252   : > { %3647 = vmatprep.mubr.msk.f32.mxu1 %vm4397_vm0, %v4398_v8  ;;  %3965 = vmatpush3.bf16.msra.mxu1 %v3964_v53  ;;  %v5938_v53 = vpack.c.bf16 %v4995_v24, %v4993_v21  ;;  %v5952_v21 = vand.u32 4294901760, %v5163_v63 }
 0x253   : > { %3966 = vmatprep.subr.bf16.mxu1 %v4396_v3 }
 0x255   : > { %3648 = vmatmul.mubr.f32.gmra.mrb[28].mxu1 %v5099_v20 }
 0x256   : > { %3650 = vmatprep.mubr.msk.f32.mxu1 %vm4397_vm0, %v4398_v8  ;;  %3968 = vmatpush3.bf16.msra.mxu1 %v5937_v52  ;;  %v3988_v52 = vpack.c.bf16 %v5943_v4, %v5942_v17 }
 0x257   : > { %3969 = vmatprep.subr.bf16.mxu1 %v4396_v3 }
 0x259   : > { %3651 = vmatmul.mubr.f32.gmra.mrb[30].mxu1 %v5114_v51 }
 0x25a   : > { %3653 = vmatprep.mubr.msk.f32.mxu1 %vm4397_vm0, %v4398_v8  ;;  %3971 = vmatpush3.bf16.msra.mxu1 %v5938_v53  ;;  %v5944_v53 = vand.u32 4294901760, %v5095_v48 }
 0x25b   : > { %3972 = vmatprep.subr.bf16.mxu1 %v4396_v3 }
 0x25d   : > { %3654 = vmatmul.mubr.f32.gmra.mrb[32].mxu1 %v5129_v28 }
 0x25e   : > { %3656 = vmatprep.mubr.msk.f32.mxu1 %vm4397_vm0, %v4398_v8 }
 0x261   : > { %3657 = vmatmul.mubr.f32.gmra.mrb[34].mxu1 %v5148_v13 }
 0x262   : > { %3659 = vmatprep.mubr.msk.f32.mxu1 %vm4397_vm0, %v4398_v8 }
 0x265   : > { %3660 = vmatmul.mubr.f32.gmra.mrb[36].mxu1 %v5167_v47 }
 0x266   : > { %3662 = vmatprep.mubr.msk.f32.mxu1 %vm4397_vm0, %v4398_v8 }
 0x269   : > { %3663 = vmatmul.mubr.f32.gmra.mrb[38].mxu1 %v5186_v9 }
 0x26a   : > { %3665 = vmatprep.mubr.msk.f32.mxu1 %vm4397_vm0, %v4398_v8 }
 0x26d   : > { %3666 = vmatmul.mubr.f32.gmra.mrb[40].mxu1 %v5205_v43 }
 0x26e   : > { %3668 = vmatprep.mubr.msk.f32.mxu1 %vm4397_vm0, %v4398_v8 }
 0x271   : > { %3669 = vmatmul.mubr.f32.gmra.mrb[42].mxu1 %v5218_v46 }
 0x272   : > { %3671 = vmatprep.mubr.msk.f32.mxu1 %vm4397_vm0, %v4398_v8 }
 0x275   : > { %3672 = vmatmul.mubr.f32.gmra.mrb[44].mxu1 %v5231_v27 }
 0x276   : > { %3674 = vmatprep.mubr.msk.f32.mxu1 %vm4397_vm0, %v4398_v8 }
 0x279   : > { %3675 = vmatmul.mubr.f32.gmra.mrb[46].mxu1 %v5244_v55 }
 0x27a   : > { %3677 = vmatprep.mubr.msk.f32.mxu1 %vm4397_vm0, %v4398_v8 }
 0x27d   : > { %3678 = vmatmul.mubr.f32.gmra.mrb[48].mxu1 %v5256_v59 }
 0x27e   : > { %3696 = vmatprep.mubr.msk.f32.mxu1 %vm4397_vm0, %v4398_v8 }
 0x281   : > { %3697 = vmatmul.mubr.f32.vlgmr.msra.gmra.mrb[50].mxu1 %v5079_v12  ;;  %v3991_v12 = vpack.c.bf16 %v5946_v62, %v5945_v61  ;;  %v5514_v62 = vld [vmem:[%s5914_s4] ss:$0 sm:$0xff] }
 0x282   : > { %3974 = vmatpush3.bf16.msra.mxu1 %v4940_v15  ;;  %3699 = vmatprep.mubr.msk.f32.mxu1 %vm4397_vm0, %v4398_v8 }
 0x283   : > { %3975 = vmatprep.subr.bf16.mxu1 %v4396_v3 }
 0x285   : > { %3700 = vmatmul.mubr.f32.gmra.mrb[52].mxu1 %v5095_v48  ;;  %v5949_v48 = vand.u32 4294901760, %v4995_v24  ;;  %v5953_v24 = vand.u32 4294901760, %v5179_v0 }
 0x286   : > { %3702 = vmatprep.mubr.msk.f32.mxu1 %vm4397_vm0, %v4398_v8  ;;  %3977 = vmatpush3.bf16.msra.mxu1 %v4952_v32 }
 0x287   : > { %3978 = vmatprep.subr.bf16.mxu1 %v4396_v3  ;;  %v3994_v23 = vpack.c.bf16 %v5949_v48, %v5948_v5 }
 0x289   : > { %3703 = vmatmul.mubr.f32.gmra.mrb[54].mxu1 %v5107_v14  ;;  %v5954_v14 = vand.u32 4294901760, %v5201_v58 }
 0x28a   : > { %3705 = vmatprep.mubr.msk.f32.mxu1 %vm4397_vm0, %v4398_v8  ;;  %3980 = vmatpush3.bf16.msra.mxu1 %v4964_v44 }
 0x28b   : > { %3981 = vmatprep.subr.bf16.mxu1 %v4396_v3 }
 0x28d   : > { %3706 = vmatmul.mubr.f32.gmra.mrb[56].mxu1 %v5125_v16  ;;  %v5955_v16 = vand.u32 4294901760, %v5214_v11 }
 0x28e   : > { %3708 = vmatprep.mubr.msk.f32.mxu1 %vm4397_vm0, %v4398_v8  ;;  %3983 = vmatpush3.bf16.msra.mxu1 %v4976_v57 }
 0x28f   : > { %3984 = vmatprep.subr.bf16.mxu1 %v4396_v3 }
 0x291   : > { %3709 = vmatmul.mubr.f32.gmra.mrb[58].mxu1 %v5141_v29  ;;  %v5956_v29 = vand.u32 4294901760, %v5227_v7 }
 0x292   : > { %3711 = vmatprep.mubr.msk.f32.mxu1 %vm4397_vm0, %v4398_v8 }
 0x295   : > { %3712 = vmatmul.mubr.f32.gmra.mrb[60].mxu1 %v5163_v63 }
 0x296   : > { %3714 = vmatprep.mubr.msk.f32.mxu1 %vm4397_vm0, %v4398_v8 }
 0x299   : > { %3715 = vmatmul.mubr.f32.gmra.mrb[62].mxu1 %v5179_v0 }
 0x29a   : > { %3717 = vmatprep.mubr.msk.f32.mxu1 %vm4397_vm0, %v4398_v8 }
 0x29d   : > { %3718 = vmatmul.mubr.f32.gmra.mrb[64].mxu1 %v5201_v58 }
 0x29e   : > { %3720 = vmatprep.mubr.msk.f32.mxu1 %vm4397_vm0, %v4398_v8 }
 0x2a1   : > { %3721 = vmatmul.mubr.f32.gmra.mrb[66].mxu1 %v5214_v11 }
 0x2a2   : > { %3723 = vmatprep.mubr.msk.f32.mxu1 %vm4397_vm0, %v4398_v8 }
 0x2a5   : > { %3724 = vmatmul.mubr.f32.gmra.mrb[68].mxu1 %v5227_v7 }
 0x2a6   : > { %3726 = vmatprep.mubr.msk.f32.mxu1 %vm4397_vm0, %v4398_v8 }
 0x2a9   : > { %3727 = vmatmul.mubr.f32.gmra.mrb[70].mxu1 %v5240_v26 }
 0x2aa   : > { %3729 = vmatprep.mubr.msk.f32.mxu1 %vm4397_vm0, %v4398_v8 }
 0x2ad   : > { %3730 = vmatmul.mubr.f32.gmra.mrb[72].mxu1 %v5253_v50 }
 0x2ae   : > { %3732 = vmatprep.mubr.msk.f32.mxu1 %vm4397_vm0, %v4398_v8 }
 0x2b1   : > { %3733 = vmatmul.mubr.f32.gmra.mrb[74].mxu1 %v5265_v56 }
 0x2b2   : > { %3751 = vmatprep.mubr.msk.f32.mxu1 %vm4397_vm0, %v4398_v8 }
 0x2b5   : > { %3752 = vmatmul.mubr.f32.vlgmr.msra.gmra.mrb[76].mxu1 %v5941_v33 }
 0x2b6   : > { %3986 = vmatpush3.bf16.msra.mxu1 %v3985_v60  ;;  %3754 = vmatprep.mubr.msk.f32.mxu1 %vm4397_vm0, %v4398_v8 }
 0x2b7   : > { %3987 = vmatprep.subr.bf16.mxu1 %v4396_v3 }
 0x2b9   : > { %3755 = vmatmul.mubr.f32.gmra.mrb[78].mxu1 %v5944_v53 }
 0x2ba   : > { %3757 = vmatprep.mubr.msk.f32.mxu1 %vm4397_vm0, %v4398_v8  ;;  %3989 = vmatpush3.bf16.msra.mxu1 %v3988_v52 }
 0x2bb   : > { %3990 = vmatprep.subr.bf16.mxu1 %v4396_v3 }
 0x2bd   : > { %3758 = vmatmul.mubr.f32.gmra.mrb[80].mxu1 %v5947_v1 }
 0x2be   : > { %3760 = vmatprep.mubr.msk.f32.mxu1 %vm4397_vm0, %v4398_v8  ;;  %3992 = vmatpush3.bf16.msra.mxu1 %v3991_v12 }
 0x2bf   : > { %3993 = vmatprep.subr.bf16.mxu1 %v4396_v3 }
 0x2c1   : > { %3761 = vmatmul.mubr.f32.gmra.mrb[82].mxu1 %v5950_v6 }
 0x2c2   : > { %3763 = vmatprep.mubr.msk.f32.mxu1 %vm4397_vm0, %v4398_v8  ;;  %3995 = vmatpush3.bf16.msra.mxu1 %v3994_v23 }
 0x2c3   : > { %3996 = vmatprep.subr.bf16.mxu1 %v4396_v3 }
 0x2c5   : > { %3764 = vmatmul.mubr.f32.gmra.mrb[84].mxu1 %v5951_v18 }
 0x2c6   : > { %3766 = vmatprep.mubr.msk.f32.mxu1 %vm4397_vm0, %v4398_v8 }
 0x2c9   : > { %3767 = vmatmul.mubr.f32.gmra.mrb[86].mxu1 %v5952_v21 }
 0x2ca   : > { %3769 = vmatprep.mubr.msk.f32.mxu1 %vm4397_vm0, %v4398_v8 }
 0x2cd   : > { %3770 = vmatmul.mubr.f32.gmra.mrb[88].mxu1 %v5953_v24 }
 0x2ce   : > { %3772 = vmatprep.mubr.msk.f32.mxu1 %vm4397_vm0, %v4398_v8 }
 0x2d1   : > { %3773 = vmatmul.mubr.f32.gmra.mrb[90].mxu1 %v5954_v14 }
 0x2d2   : > { %3775 = vmatprep.mubr.msk.f32.mxu1 %vm4397_vm0, %v4398_v8 }
 0x2d5   : > { %3776 = vmatmul.mubr.f32.gmra.mrb[92].mxu1 %v5955_v16 }
 0x2d6   : > { %3778 = vmatprep.mubr.msk.f32.mxu1 %vm4397_vm0, %v4398_v8 }
 0x2d9   : > { %3779 = vmatmul.mubr.f32.gmra.mrb[94].mxu1 %v5956_v29 }
 0x2da   : > { %3781 = vmatprep.mubr.msk.f32.mxu1 %vm4397_vm0, %v4398_v8 }
 0x2dd   : > { %3782 = vmatmul.mubr.f32.gmra.mrb[96].mxu1 %v1660_v2 }
 0x2de   : > { %3784 = vmatprep.mubr.msk.f32.mxu1 %vm4397_vm0, %v4398_v8 }
 0x2e1   : > { %3785 = vmatmul.mubr.f32.gmra.mrb[98].mxu1 %v1670_v54 }
 0x2e2   : > { %3787 = vmatprep.mubr.msk.f32.mxu1 %vm4397_vm0, %v4398_v8 }
 0x2e5   : > { %3788 = vmatmul.mubr.f32.gmra.mrb[100].mxu1 %v1680_v39 }
 0x2e6   : > { %3806 = vmatprep.mubr.msk.f32.mxu1 %vm4397_vm0, %v4398_v8 }
 0x2e9   : > { %3807 = vmatmul.mubr.f32.vlgmr.msra.gmra.mrb[102].mxu1 %v5073_v40 }
 0x2ea   : > { %3998 = vmatpush3.bf16.msra.mxu1 %v4940_v15  ;;  %3809 = vmatprep.mubr.msk.f32.mxu1 %vm4397_vm0, %v4398_v8 }
 0x2eb   : > { %v1564_v63 = vpop.f32.mrb[26].mxu0  ;;  %3999 = vmatprep.subr.bf16.mxu1 %v4396_v3 }
 0x2ec   : > { %v3588_v0 = vpop.f32.mrb[27].mxu0  ;;  %v1565_v5 = vadd.f32 %v5514_v62, %v1564_v63 }
 0x2ed   : > { %3810 = vmatmul.mubr.f32.gmra.mrb[104].mxu1 %v5084_v36 }
 0x2ee   : > { %3812 = vmatprep.mubr.msk.f32.mxu1 %vm4397_vm0, %v4398_v8  ;;  %4001 = vmatpush3.bf16.msra.mxu1 %v4952_v32 }
 0x2ef   : > { %4002 = vmatprep.subr.bf16.mxu1 %v4396_v3 }
 0x2f0   : > { %v1574_v58 = vpop.f32.mrb[0].mxu1 }
 0x2f1   : > { %v3591_v11 = vpop.f32.mrb[1].mxu1  ;;  %3813 = vmatmul.mubr.f32.gmra.mrb[106].mxu1 %v5099_v20  ;;  %v1575_v18 = vadd.f32 %v5514_v62, %v1574_v58 }
 0x2f2   : > { %3815 = vmatprep.mubr.msk.f32.mxu1 %vm4397_vm0, %v4398_v8  ;;  %4004 = vmatpush3.bf16.msra.mxu1 %v4964_v44 }
 0x2f3   : > { %4005 = vmatprep.subr.bf16.mxu1 %v4396_v3 }
 0x2f4   : > { %v1584_v15 = vpop.f32.mrb[2].mxu1 }
 0x2f5   : > { %v3594_v7 = vpop.f32.mrb[3].mxu1  ;;  %3816 = vmatmul.mubr.f32.gmra.mrb[108].mxu1 %v5114_v51  ;;  %v1585_v14 = vadd.f32 %v5514_v62, %v1584_v15 }
 0x2f6   : > { %3818 = vmatprep.mubr.msk.f32.mxu1 %vm4397_vm0, %v4398_v8  ;;  %4007 = vmatpush3.bf16.msra.mxu1 %v4976_v57 }
 0x2f8   : > { %v1594_v32 = vpop.f32.mrb[4].mxu1 }
 0x2f9   : > { %v3597_v50 = vpop.f32.mrb[5].mxu1  ;;  %3819 = vmatmul.mubr.f32.gmra.mrb[110].mxu1 %v5129_v28  ;;  %v1595_v63 = vadd.f32 %v5514_v62, %v1594_v32 }
 0x2fa   : > { %3821 = vmatprep.mubr.msk.f32.mxu1 %vm4397_vm0, %v4398_v8 }
 0x2fc   : > { %v1604_v26 = vpop.f32.mrb[6].mxu1 }
 0x2fd   : > { %v3600_v44 = vpop.f32.mrb[7].mxu1  ;;  %3822 = vmatmul.mubr.f32.gmra.mrb[112].mxu1 %v5148_v13  ;;  %v1605_v11 = vadd.f32 %v5514_v62, %v1604_v26 }
 0x2fe   : > { %3824 = vmatprep.mubr.msk.f32.mxu1 %vm4397_vm0, %v4398_v8 }
 0x300   : > { %v5476_v3 = vpop.f32.mrb[8].mxu1 }
 0x301   : > { %v3603_v2 = vpop.f32.mrb[9].mxu1  ;;  %3825 = vmatmul.mubr.f32.gmra.mrb[114].mxu1 %v5167_v47 }
 0x302   : > { %3827 = vmatprep.mubr.msk.f32.mxu1 %vm4397_vm0, %v4398_v8 }
 0x304   : > { %v5481_v57 = vpop.f32.mrb[10].mxu1 }
 0x305   : > { %v3606_v54 = vpop.f32.mrb[11].mxu1  ;;  %3828 = vmatmul.mubr.f32.gmra.mrb[116].mxu1 %v5186_v9 }
 0x306   : > { %3830 = vmatprep.mubr.msk.f32.mxu1 %vm4397_vm0, %v4398_v8 }
 0x308   : > { %v5486_v56 = vpop.f32.mrb[12].mxu1 }
 0x309   : > { %v3609_v39 = vpop.f32.mrb[13].mxu1  ;;  %3831 = vmatmul.mubr.f32.gmra.mrb[118].mxu1 %v5205_v43 }
 0x30a   : > { %3833 = vmatprep.mubr.msk.f32.mxu1 %vm4397_vm0, %v4398_v8 }
 0x30c   : > { %v5491_v19 = vpop.f32.mrb[14].mxu1 }
 0x30d   : > { %v3612_v60 = vpop.f32.mrb[15].mxu1  ;;  %3834 = vmatmul.mubr.f32.gmra.mrb[120].mxu1 %v5218_v46 }
 0x30e   : > { %3836 = vmatprep.mubr.msk.f32.mxu1 %vm4397_vm0, %v4398_v8 }
 0x310   : > { %v5496_v33 = vpop.f32.mrb[16].mxu1 }
 0x311   : > { %v3615_v17 = vpop.f32.mrb[17].mxu1  ;;  %3837 = vmatmul.mubr.f32.gmra.mrb[122].mxu1 %v5231_v27 }
 0x312   : > { %3839 = vmatprep.mubr.msk.f32.mxu1 %vm4397_vm0, %v4398_v8 }
 0x314   : > { %v5501_v4 = vpop.f32.mrb[18].mxu1 }
 0x315   : > { %v3618_v52 = vpop.f32.mrb[19].mxu1  ;;  %3840 = vmatmul.mubr.f32.gmra.mrb[124].mxu1 %v5244_v55 }
 0x316   : > { %3842 = vmatprep.mubr.msk.f32.mxu1 %vm4397_vm0, %v4398_v8 }
 0x318   : > { %v5506_v53 = vpop.f32.mrb[20].mxu1 }
 0x319   : > { %v3621_v61 = vpop.f32.mrb[21].mxu1  ;;  %3843 = vmatmul.mubr.f32.gmra.mrb[126].mxu1 %v5256_v59 }
 0x31a   : > { %3861 = vmatprep.mubr.msk.f32.mxu1 %vm4397_vm0, %v4398_v8 }
 0x31c   : > { %v5516_v12 = vpop.f32.mrb[22].mxu1 }
 0x31d   : > { %v3624_v1 = vpop.f32.mrb[23].mxu1  ;;  %3862 = vmatmul.mubr.f32.vlgmr.msra.gmra.mrb[128].mxu1 %v5073_v40 }
 0x31e   : > { %3864 = vmatprep.mubr.msk.f32.mxu1 %vm4397_vm0, %v4398_v8 }
 0x320   : > { %v1795_v48 = vpop.f32.mrb[24].mxu1 }
 0x321   : > { %v5522_v23 = vadd.f32 %v1795_v48, %v1565_v5  ;;  %v3643_v6 = vpop.f32.mrb[25].mxu1  ;;  %3865 = vmatmul.mubr.f32.gmra.mrb[130].mxu1 %v5084_v36 }
 0x322   : > { %3867 = vmatprep.mubr.msk.f32.mxu1 %vm4397_vm0, %v4398_v8 }
 0x324   : > { %v1801_v21 = vpop.f32.mrb[26].mxu1 }
 0x325   : > { %v5528_v24 = vadd.f32 %v1801_v21, %v1575_v18  ;;  %v3646_v40 = vpop.f32.mrb[27].mxu1  ;;  %3868 = vmatmul.mubr.f32.gmra.mrb[132].mxu1 %v5099_v20  ;;  %v1685_v21 = vadd.f32 %v5514_v62, %v5516_v12 }
 0x326   : > { %3870 = vmatprep.mubr.msk.f32.mxu1 %vm4397_vm0, %v4398_v8 }
 0x328   : > { %v1807_v16 = vpop.f32.mrb[28].mxu1 }
 0x329   : > { %v5534_v29 = vadd.f32 %v1807_v16, %v1585_v14  ;;  %v3649_v36 = vpop.f32.mrb[29].mxu1  ;;  %3871 = vmatmul.mubr.f32.gmra.mrb[134].mxu1 %v5114_v51  ;;  %v1615_v51 = vadd.f32 %v5514_v62, %v5476_v3  ;;  %v1635_v3 = vadd.f32 %v5514_v62, %v5486_v56  ;;  %v1655_v56 = vadd.f32 %v5514_v62, %v5496_v33 }
 0x32a   : > { %3873 = vmatprep.mubr.msk.f32.mxu1 %vm4397_vm0, %v4398_v8  ;;  %v1675_v33 = vadd.f32 %v5514_v62, %v5506_v53 }
 0x32c   : > { %v1813_v0 = vpop.f32.mrb[30].mxu1 }
 0x32d   : > { %v5540_v58 = vadd.f32 %v1813_v0, %v1595_v63  ;;  %v3652_v20 = vpop.f32.mrb[31].mxu1  ;;  %3874 = vmatmul.mubr.f32.gmra.mrb[136].mxu1 %v5129_v28  ;;  %v1625_v28 = vadd.f32 %v5514_v62, %v5481_v57  ;;  %v1645_v57 = vadd.f32 %v5514_v62, %v5491_v19  ;;  %v1665_v19 = vadd.f32 %v5514_v62, %v5501_v4 }
 0x32e   : > { %3876 = vmatprep.mubr.msk.f32.mxu1 %vm4397_vm0, %v4398_v8 }
 0x330   : > { %v1819_v15 = vpop.f32.mrb[32].mxu1 }
 0x331   : > { %v1820_v7 = vadd.f32 %v1819_v15, %v1605_v11  ;;  %v3655_v50 = vpop.f32.mrb[33].mxu1  ;;  %3877 = vmatmul.mubr.f32.gmra.mrb[138].mxu1 %v5148_v13 }
 0x332   : > { %3879 = vmatprep.mubr.msk.f32.mxu1 %vm4397_vm0, %v4398_v8 }
 0x334   : > { %v1825_v32 = vpop.f32.mrb[34].mxu1 }
 0x335   : > { %v1826_v44 = vadd.f32 %v1825_v32, %v1615_v51  ;;  %v3658_v2 = vpop.f32.mrb[35].mxu1  ;;  %3880 = vmatmul.mubr.f32.gmra.mrb[140].mxu1 %v5167_v47 }
 0x336   : > { %3882 = vmatprep.mubr.msk.f32.mxu1 %vm4397_vm0, %v4398_v8 }
 0x338   : > { %v1831_v26 = vpop.f32.mrb[36].mxu1 }
 0x339   : > { %v1832_v54 = vadd.f32 %v1831_v26, %v1625_v28  ;;  %v3661_v13 = vpop.f32.mrb[37].mxu1  ;;  %3883 = vmatmul.mubr.f32.gmra.mrb[142].mxu1 %v5186_v9 }
 0x33a   : > { %3885 = vmatprep.mubr.msk.f32.mxu1 %vm4397_vm0, %v4398_v8 }
 0x33c   : > { %v1837_v39 = vpop.f32.mrb[38].mxu1 }
 0x33d   : > { %v1838_v60 = vadd.f32 %v1837_v39, %v1635_v3  ;;  %v3664_v47 = vpop.f32.mrb[39].mxu1  ;;  %3886 = vmatmul.mubr.f32.gmra.mrb[144].mxu1 %v5205_v43 }
 0x33e   : > { %3888 = vmatprep.mubr.msk.f32.mxu1 %vm4397_vm0, %v4398_v8 }
 0x340   : > { %v1843_v17 = vpop.f32.mrb[40].mxu1 }
 0x341   : > { %v1844_v52 = vadd.f32 %v1843_v17, %v1645_v57  ;;  %v3667_v9 = vpop.f32.mrb[41].mxu1  ;;  %3889 = vmatmul.mubr.f32.gmra.mrb[146].mxu1 %v5218_v46 }
 0x342   : > { %3891 = vmatprep.mubr.msk.f32.mxu1 %vm4397_vm0, %v4398_v8 }
 0x344   : > { %v1849_v61 = vpop.f32.mrb[42].mxu1 }
 0x345   : > { %v1850_v1 = vadd.f32 %v1849_v61, %v1655_v56  ;;  %v3670_v43 = vpop.f32.mrb[43].mxu1  ;;  %3892 = vmatmul.mubr.f32.gmra.mrb[148].mxu1 %v5231_v27 }
 0x346   : > { %3894 = vmatprep.mubr.msk.f32.mxu1 %vm4397_vm0, %v4398_v8 }
 0x348   : > { %v1855_v5 = vpop.f32.mrb[44].mxu1 }
 0x349   : > { %v1856_v48 = vadd.f32 %v1855_v5, %v1665_v19  ;;  %v3673_v46 = vpop.f32.mrb[45].mxu1  ;;  %3895 = vmatmul.mubr.f32.gmra.mrb[150].mxu1 %v5244_v55 }
 0x34a   : > { %3897 = vmatprep.mubr.msk.f32.mxu1 %vm4397_vm0, %v4398_v8 }
 0x34c   : > { %v1861_v6 = vpop.f32.mrb[46].mxu1 }
 0x34d   : > { %v1862_v18 = vadd.f32 %v1861_v6, %v1675_v33  ;;  %v3676_v27 = vpop.f32.mrb[47].mxu1  ;;  %3898 = vmatmul.mubr.f32.gmra.mrb[152].mxu1 %v5256_v59 }
 0x350   : > { %v1867_v4 = vpop.f32.mrb[48].mxu1 }
 0x351   : > { %v1868_v40 = vadd.f32 %v1867_v4, %v1685_v21  ;;  %v3679_v14 = vpop.f32.mrb[49].mxu1 }
 0x354   : > { %v1955_v16 = vpop.f32.mrb[50].mxu1 }
 0x355   : > { %v1956_v55 = vadd.f32 %v1955_v16, %v5522_v23  ;;  %v3698_v36 = vpop.f32.mrb[51].mxu1 }
 0x358   : > { %v1962_v63 = vpop.f32.mrb[52].mxu1 }
 0x359   : > { %v1963_v8 = vadd.f32 %v1962_v63, %v5528_v24  ;;  %v3701_v0 = vpop.f32.mrb[53].mxu1 }
 0x35c   : > { %v1969_v53 = vpop.f32.mrb[54].mxu1 }
 0x35d   : > { %v1970_v20 = vadd.f32 %v1969_v53, %v5534_v29  ;;  %v3704_v11 = vpop.f32.mrb[55].mxu1 }
 0x360   : > { %v1976_v15 = vpop.f32.mrb[56].mxu1 }
 0x361   : > { %v1977_v59 = vadd.f32 %v1976_v15, %v5540_v58  ;;  %v3707_v50 = vpop.f32.mrb[57].mxu1 }
 0x364   : > { %v1983_v62 = vpop.f32.mrb[58].mxu1 }
 0x365   : > { %v1984_v12 = vadd.f32 %v1983_v62, %v1820_v7  ;;  %v3710_v51 = vpop.f32.mrb[59].mxu1 }
 0x368   : > { %v1990_v32 = vpop.f32.mrb[60].mxu1 }
 0x369   : > { %v1991_v2 = vadd.f32 %v1990_v32, %v1826_v44  ;;  %v3713_v28 = vpop.f32.mrb[61].mxu1 }
 0x36c   : > { %v1997_v23 = vpop.f32.mrb[62].mxu1 }
 0x36d   : > { %v1998_v26 = vadd.f32 %v1997_v23, %v1832_v54  ;;  %v3716_v13 = vpop.f32.mrb[63].mxu1 }
 0x370   : > { %v2004_v3 = vpop.f32.mrb[64].mxu1 }
 0x371   : > { %v2005_v24 = vadd.f32 %v2004_v3, %v1838_v60  ;;  %v3719_v39 = vpop.f32.mrb[65].mxu1 }
 0x374   : > { %v2011_v47 = vpop.f32.mrb[66].mxu1 }
 0x375   : > { %v2012_v57 = vadd.f32 %v2011_v47, %v1844_v52  ;;  %v3722_v29 = vpop.f32.mrb[67].mxu1 }
 0x378   : > { %v2018_v17 = vpop.f32.mrb[68].mxu1 }
 0x379   : > { %v2019_v9 = vadd.f32 %v2018_v17, %v1850_v1  ;;  %v3725_v56 = vpop.f32.mrb[69].mxu1 }
 0x37c   : > { %v2025_v58 = vpop.f32.mrb[70].mxu1 }
 0x37d   : > { %v2026_v61 = vadd.f32 %v2025_v58, %v1856_v48  ;;  %v3728_v43 = vpop.f32.mrb[71].mxu1 }
 0x380   : > { %v2032_v7 = vpop.f32.mrb[72].mxu1 }
 0x381   : > { %v2033_v19 = vadd.f32 %v2032_v7, %v1862_v18  ;;  %v3731_v5 = vpop.f32.mrb[73].mxu1 }
 0x384   : > { %v2039_v44 = vpop.f32.mrb[74].mxu1 }
 0x385   : > { %v2040_v46 = vadd.f32 %v2039_v44, %v1868_v40  ;;  %v3734_v33 = vpop.f32.mrb[75].mxu1 }
 0x388   : > { %v2120_v54 = vpop.f32.mrb[76].mxu1 }
 0x389   : > { %v2121_v6 = vadd.f32 %v2120_v54, %v1956_v55  ;;  %v3753_v27 = vpop.f32.mrb[77].mxu1 }
 0x38c   : > { %v2128_v60 = vpop.f32.mrb[78].mxu1 }
 0x38d   : > { %v2129_v21 = vadd.f32 %v2128_v60, %v1963_v8  ;;  %v3756_v4 = vpop.f32.mrb[79].mxu1 }
 0x390   : > { %v2136_v52 = vpop.f32.mrb[80].mxu1 }
 0x391   : > { %v2137_v14 = vadd.f32 %v2136_v52, %v1970_v20  ;;  %v3759_v16 = vpop.f32.mrb[81].mxu1 }
 0x394   : > { %v2144_v1 = vpop.f32.mrb[82].mxu1 }
 0x395   : > { %v2145_v36 = vadd.f32 %v2144_v1, %v1977_v59  ;;  %v3762_v63 = vpop.f32.mrb[83].mxu1 }
 0x398   : > { %v2152_v48 = vpop.f32.mrb[84].mxu1 }
 0x399   : > { %v2153_v0 = vadd.f32 %v2152_v48, %v1984_v12  ;;  %v3765_v53 = vpop.f32.mrb[85].mxu1 }
 0x39c   : > { %v2160_v18 = vpop.f32.mrb[86].mxu1 }
 0x39d   : > { %v2161_v11 = vadd.f32 %v2160_v18, %v1991_v2  ;;  %v3768_v15 = vpop.f32.mrb[87].mxu1 }
 0x3a0   : > { %v2168_v40 = vpop.f32.mrb[88].mxu1 }
 0x3a1   : > { %v2169_v50 = vadd.f32 %v2168_v40, %v1998_v26  ;;  %v3771_v62 = vpop.f32.mrb[89].mxu1 }
 0x3a4   : > { %v2176_v55 = vpop.f32.mrb[90].mxu1 }
 0x3a5   : > { %v2177_v51 = vadd.f32 %v2176_v55, %v2005_v24  ;;  %v3774_v32 = vpop.f32.mrb[91].mxu1 }
 0x3a8   : > { %v2184_v8 = vpop.f32.mrb[92].mxu1 }
 0x3a9   : > { %v2185_v28 = vadd.f32 %v2184_v8, %v2012_v57  ;;  %v3777_v23 = vpop.f32.mrb[93].mxu1 }
 0x3ac   : > { %v2192_v20 = vpop.f32.mrb[94].mxu1 }
 0x3ad   : > { %v2193_v13 = vadd.f32 %v2192_v20, %v2019_v9  ;;  %v3780_v3 = vpop.f32.mrb[95].mxu1 }
 0x3b0   : > { %v2200_v59 = vpop.f32.mrb[96].mxu1 }
 0x3b1   : > { %v2201_v39 = vadd.f32 %v2200_v59, %v2026_v61  ;;  %v3783_v47 = vpop.f32.mrb[97].mxu1 }
 0x3b4   : > { %v2208_v12 = vpop.f32.mrb[98].mxu1 }
 0x3b5   : > { %v2209_v29 = vadd.f32 %v2208_v12, %v2033_v19  ;;  %v3786_v17 = vpop.f32.mrb[99].mxu1 }
 0x3b8   : > { %v2216_v2 = vpop.f32.mrb[100].mxu1 }
 0x3b9   : > { %v2217_v56 = vadd.f32 %v2216_v2, %v2040_v46  ;;  %v3789_v58 = vpop.f32.mrb[101].mxu1 }
 0x3bc   : > { %v2311_v26 = vpop.f32.mrb[102].mxu1 }
 0x3bd   : > { %v2312_v43 = vadd.f32 %v2311_v26, %v2121_v6  ;;  %v3808_v7 = vpop.f32.mrb[103].mxu1 }
 0x3c0   : > { %v2317_v24 = vpop.f32.mrb[104].mxu1 }
 0x3c1   : > { %v2318_v5 = vadd.f32 %v2317_v24, %v2129_v21  ;;  %v3811_v44 = vpop.f32.mrb[105].mxu1 }
 0x3c4   : > { %v2323_v57 = vpop.f32.mrb[106].mxu1 }
 0x3c5   : > { %v2324_v33 = vadd.f32 %v2323_v57, %v2137_v14  ;;  %v3814_v54 = vpop.f32.mrb[107].mxu1 }
 0x3c8   : > { %v2329_v9 = vpop.f32.mrb[108].mxu1 }
 0x3c9   : > { %v2330_v27 = vadd.f32 %v2329_v9, %v2145_v36  ;;  %v3817_v60 = vpop.f32.mrb[109].mxu1 }
 0x3cc   : > { %v2335_v61 = vpop.f32.mrb[110].mxu1 }
 0x3cd   : > { %v2336_v4 = vadd.f32 %v2335_v61, %v2153_v0  ;;  %v3820_v52 = vpop.f32.mrb[111].mxu1 }
 0x3d0   : > { %v2341_v19 = vpop.f32.mrb[112].mxu1 }
 0x3d1   : > { %v2342_v16 = vadd.f32 %v2341_v19, %v2161_v11  ;;  %v3823_v1 = vpop.f32.mrb[113].mxu1 }
 0x3d4   : > { %v2347_v46 = vpop.f32.mrb[114].mxu1 }
 0x3d5   : > { %v2348_v63 = vadd.f32 %v2347_v46, %v2169_v50  ;;  %v3826_v48 = vpop.f32.mrb[115].mxu1 }
 0x3d8   : > { %v2353_v6 = vpop.f32.mrb[116].mxu1 }
 0x3d9   : > { %v2354_v53 = vadd.f32 %v2353_v6, %v2177_v51  ;;  %v3829_v18 = vpop.f32.mrb[117].mxu1 }
 0x3dc   : > { %v2359_v21 = vpop.f32.mrb[118].mxu1 }
 0x3dd   : > { %v2360_v15 = vadd.f32 %v2359_v21, %v2185_v28  ;;  %v3832_v40 = vpop.f32.mrb[119].mxu1 }
 0x3e0   : > { %v2365_v14 = vpop.f32.mrb[120].mxu1 }
 0x3e1   : > { %v5588_v62 = vadd.f32 %v2365_v14, %v2193_v13  ;;  %v3835_v36 = vpop.f32.mrb[121].mxu1 }
 0x3e4   : > { %v2371_v55 = vpop.f32.mrb[122].mxu1 }
 0x3e5   : > { %v5590_v32 = vadd.f32 %v2371_v55, %v2201_v39  ;;  %v3838_v0 = vpop.f32.mrb[123].mxu1 }
 0x3e8   : > { %v2377_v8 = vpop.f32.mrb[124].mxu1 }
 0x3e9   : > { %v5592_v11 = vadd.f32 %v2377_v8, %v2209_v29  ;;  %v3841_v23 = vpop.f32.mrb[125].mxu1 }
 0x3ec   : > { %v2383_v50 = vpop.f32.mrb[126].mxu1 }
 0x3ed   : > { %v5594_v20 = vadd.f32 %v2383_v50, %v2217_v56  ;;  %v3844_v51 = vpop.f32.mrb[127].mxu1 }
 0x3f0   : > { %v2462_v3 = vpop.f32.mrb[128].mxu1 }
 0x3f1   : > { %v2463_v59 = vadd.f32 %v2462_v3, %v2312_v43  ;;  %v3863_v28 = vpop.f32.mrb[129].mxu1 }
 0x3f3   : > { %v5597_v47 = vadd.f32 %v5051_v10, %v2463_v59 }
 0x3f4   : > { %v2468_v13 = vpop.f32.mrb[130].mxu1 }
 0x3f5   : > { %v2469_v12 = vadd.f32 %v2468_v13, %v2318_v5  ;;  %v3866_v17 = vpop.f32.mrb[131].mxu1  ;;  %v2551_v39 = vsel %vm1445_vm2, %v5597_v47, 0.0 }
 0x3f6   : > { %2552 = vadd.xlane.f32.xlu0 %v2551_v39 }
 0x3f7   : > { %v5602_v29 = vadd.f32 %v5055_v22, %v2469_v12 }
 0x3f8   : > { %v2474_v2 = vpop.f32.mrb[132].mxu1 }
 0x3f9   : > { %v2475_v56 = vadd.f32 %v2474_v2, %v2324_v33  ;;  %v3869_v58 = vpop.f32.mrb[133].mxu1  ;;  %v2554_v26 = vsel %vm1445_vm2, %v5602_v29, 0.0 }
 0x3fa   : > { %2555 = vadd.xlane.f32.xlu0 %v2554_v26 }
 0x3fb   : > { %v5607_v10 = vadd.f32 %v5059_v35, %v2475_v56 }
 0x3fc   : > { %v2480_v43 = vpop.f32.mrb[134].mxu1 }
 0x3fd   : > { %v2481_v7 = vadd.f32 %v2480_v43, %v2330_v27  ;;  %v3872_v24 = vpop.f32.mrb[135].mxu1  ;;  %v2557_v5 = vsel %vm1445_vm2, %v5607_v10, 0.0 }
 0x3fe   : > { %2558 = vadd.xlane.f32.xlu1 %v2557_v5 }
 0x3ff   : > { %v5612_v22 = vadd.f32 %v5063_v45, %v2481_v7 }
 0x400   : > { %v2486_v44 = vpop.f32.mrb[136].mxu1 }
 0x401   : > { %v2487_v57 = vadd.f32 %v2486_v44, %v2336_v4  ;;  %v3875_v33 = vpop.f32.mrb[137].mxu1  ;;  %v2560_v54 = vsel %vm1445_vm2, %v5612_v22, 0.0 }
 0x402   : > { %2561 = vadd.xlane.f32.xlu1 %v2560_v54 }
 0x403   : > { %v5617_v35 = vadd.f32 %v5068_v49, %v2487_v57 }
 0x404   : > { %v2492_v9 = vpop.f32.mrb[138].mxu1 }
 0x405   : > { %v2493_v27 = vadd.f32 %v2492_v9, %v2342_v16  ;;  %v3878_v60 = vpop.f32.mrb[139].mxu1  ;;  %v2563_v61 = vsel %vm1445_vm2, %v5617_v35, 0.0 }
 0x406   : > { %2564 = vadd.xlane.f32.xlu0 %v2563_v61 }
 0x407   : > { %v5622_v45 = vadd.f32 %v5076_v41, %v2493_v27 }
 0x408   : > { %v2498_v52 = vpop.f32.mrb[140].mxu1 }
 0x409   : > { %v2499_v4 = vadd.f32 %v2498_v52, %v2348_v63  ;;  %v3881_v19 = vpop.f32.mrb[141].mxu1  ;;  %v2566_v1 = vsel %vm1445_vm2, %v5622_v45, 0.0 }
 0x40a   : > { %2567 = vadd.xlane.f32.xlu1 %v2566_v1 }
 0x40b   : > { %v5627_v49 = vadd.f32 %v5087_v37, %v2499_v4 }
 0x40c   : > { %v2504_v46 = vpop.f32.mrb[142].mxu1 }
 0x40d   : > { %v2505_v16 = vadd.f32 %v2504_v46, %v2354_v53  ;;  %v3884_v48 = vpop.f32.mrb[143].mxu1  ;;  %v2569_v6 = vsel %vm1445_vm2, %v5627_v49, 0.0 }
 0x40e   : > { %2570 = vadd.xlane.f32.xlu0 %v2569_v6 }
 0x40f   : > { %v5632_v41 = vadd.f32 %v5102_v25, %v2505_v16 }
 0x410   : > { %v2510_v18 = vpop.f32.mrb[144].mxu1 }
 0x411   : > { %v2511_v63 = vadd.f32 %v2510_v18, %v2360_v15  ;;  %v3887_v21 = vpop.f32.mrb[145].mxu1  ;;  %v2572_v40 = vsel %vm1445_vm2, %v5632_v41, 0.0 }
 0x412   : > { %2573 = vadd.xlane.f32.xlu1 %v2572_v40 }
 0x413   : > { %v5637_v37 = vadd.f32 %v5117_v34, %v2511_v63 }
 0x414   : > { %v2516_v14 = vpop.f32.mrb[146].mxu1 }
 0x415   : > { %v2517_v53 = vadd.f32 %v2516_v14, %v5588_v62  ;;  %v3890_v36 = vpop.f32.mrb[147].mxu1  ;;  %v2575_v55 = vsel %vm1445_vm2, %v5637_v37, 0.0 }
 0x416   : > { %2576 = vadd.xlane.f32.xlu0 %v2575_v55 }
 0x417   : > { %v5643_v25 = vadd.f32 %v5133_v30, %v2517_v53 }
 0x418   : > { %v2522_v15 = vpop.f32.mrb[148].mxu1 }
 0x419   : > { %v2523_v0 = vadd.f32 %v2522_v15, %v5590_v32  ;;  %v3893_v8 = vpop.f32.mrb[149].mxu1  ;;  %v2578_v23 = vsel %vm1445_vm2, %v5643_v25, 0.0 }
 0x41a   : > { %2579 = vadd.xlane.f32.xlu1 %v2578_v23 }
 0x41b   : > { %v5649_v34 = vadd.f32 %v5151_v38, %v2523_v0 }
 0x41c   : > { %v2528_v62 = vpop.f32.mrb[150].mxu1 }
 0x41d   : > { %v2529_v50 = vadd.f32 %v2528_v62, %v5592_v11  ;;  %v3896_v51 = vpop.f32.mrb[151].mxu1  ;;  %v2581_v3 = vsel %vm1445_vm2, %v5649_v34, 0.0 }
 0x41e   : > { %2582 = vadd.xlane.f32.xlu0 %v2581_v3 }
 0x41f   : > { %v5655_v30 = vadd.f32 %v5170_v31, %v2529_v50 }
 0x420   : > { %v2534_v32 = vpop.f32.mrb[152].mxu1 }
 0x421   : > { %v2535_v59 = vadd.f32 %v2534_v32, %v5594_v20  ;;  %v3899_v28 = vpop.f32.mrb[153].mxu1  ;;  %v2584_v13 = vsel %vm1445_vm2, %v5655_v30, 0.0 }
 0x422   : > { %2585 = vadd.xlane.f32.xlu1 %v2584_v13 }
 0x423   : > { %v5661_v38 = vadd.f32 %v5189_v42, %v2535_v59 }
 0x425   : > { %v2587_v11 = vsel %vm1445_vm2, %v5661_v38, 0.0 }
 0x426   : > { %2588 = vadd.xlane.f32.xlu0 %v2587_v11 }
 0x483   : > { %v2553_v12 = vpop.xlane.xlu0 %2552 }
 0x484   : > { %v2590_v17 = vmul.f32 0.015625, %v2553_v12 }
 0x486   : > { %v5666_v31 = vsub.f32 %v5597_v47, %v2590_v17 }
 0x487   : > { %v2556_v39 = vpop.xlane.xlu0 %2555 }
 0x488   : > { %v2591_v2 = vmul.f32 0.015625, %v2556_v39  ;;  %v2616_v20 = vmul.f32 %v5666_v31, %v5666_v31 }
 0x48a   : > { %v5671_v56 = vsub.f32 %v5602_v29, %v2591_v2  ;;  %v2629_v42 = vsel %vm1445_vm2, %v2616_v20, 0.0 }
 0x48b   : > { %v2559_v58 = vpop.xlane.xlu1 %2558  ;;  %2630 = vadd.xlane.f32.xlu1 %v2629_v42 }
 0x48c   : > { %v2592_v26 = vmul.f32 0.015625, %v2559_v58  ;;  %v2617_v43 = vmul.f32 %v5671_v56, %v5671_v56 }
 0x48e   : > { %v5677_v7 = vsub.f32 %v5607_v10, %v2592_v26  ;;  %v2632_v47 = vsel %vm1445_vm2, %v2617_v43, 0.0 }
 0x48f   : > { %v2562_v24 = vpop.xlane.xlu1 %2561  ;;  %2633 = vadd.xlane.f32.xlu0 %v2632_v47 }
 0x490   : > { %v2593_v5 = vmul.f32 0.015625, %v2562_v24  ;;  %v2618_v29 = vmul.f32 %v5677_v7, %v5677_v7 }
 0x492   : > { %v5683_v44 = vsub.f32 %v5612_v22, %v2593_v5  ;;  %v2635_v57 = vsel %vm1445_vm2, %v2618_v29, 0.0 }
 0x493   : > { %2636 = vadd.xlane.f32.xlu1 %v2635_v57  ;;  %v2565_v33 = vpop.xlane.xlu0 %2564  ;;  %v5747_v57 = vld [vmem:[%s5915_s5] ss:$0 sm:$0xff] }
 0x494   : > { %v2594_v54 = vmul.f32 0.015625, %v2565_v33  ;;  %v2619_v10 = vmul.f32 %v5683_v44, %v5683_v44 }
 0x496   : > { %v5689_v9 = vsub.f32 %v5617_v35, %v2594_v54  ;;  %v2638_v27 = vsel %vm1445_vm2, %v2619_v10, 0.0 }
 0x497   : > { %v2568_v60 = vpop.xlane.xlu1 %2567  ;;  %2639 = vadd.xlane.f32.xlu0 %v2638_v27  ;;  %v5753_v27 = vld [vmem:[%s5916_s6] ss:$0 sm:$0xff] }
 0x498   : > { %v2595_v61 = vmul.f32 0.015625, %v2568_v60  ;;  %v2620_v22 = vmul.f32 %v5689_v9, %v5689_v9 }
 0x49a   : > { %v5695_v52 = vsub.f32 %v5622_v45, %v2595_v61  ;;  %v2641_v4 = vsel %vm1445_vm2, %v2620_v22, 0.0 }
 0x49b   : > { %2642 = vadd.xlane.f32.xlu1 %v2641_v4  ;;  %v2571_v19 = vpop.xlane.xlu0 %2570 }
 0x49c   : > { %v2596_v1 = vmul.f32 0.015625, %v2571_v19  ;;  %v2621_v35 = vmul.f32 %v5695_v52, %v5695_v52 }
 0x49e   : > { %v5701_v46 = vsub.f32 %v5627_v49, %v2596_v1  ;;  %v2644_v16 = vsel %vm1445_vm2, %v2621_v35, 0.0 }
 0x49f   : > { %v2574_v48 = vpop.xlane.xlu1 %2573  ;;  %2645 = vadd.xlane.f32.xlu0 %v2644_v16 }
 0x4a0   : > { %v2597_v6 = vmul.f32 0.015625, %v2574_v48  ;;  %v2622_v45 = vmul.f32 %v5701_v46, %v5701_v46 }
 0x4a2   : > { %v5707_v18 = vsub.f32 %v5632_v41, %v2597_v6  ;;  %v2647_v63 = vsel %vm1445_vm2, %v2622_v45, 0.0 }
 0x4a3   : > { %2648 = vadd.xlane.f32.xlu1 %v2647_v63  ;;  %v2577_v21 = vpop.xlane.xlu0 %2576 }
 0x4a4   : > { %v2598_v40 = vmul.f32 0.015625, %v2577_v21  ;;  %v2623_v49 = vmul.f32 %v5707_v18, %v5707_v18 }
 0x4a6   : > { %v5713_v14 = vsub.f32 %v5637_v37, %v2598_v40  ;;  %v2650_v53 = vsel %vm1445_vm2, %v2623_v49, 0.0 }
 0x4a7   : > { %v2580_v36 = vpop.xlane.xlu1 %2579  ;;  %2651 = vadd.xlane.f32.xlu0 %v2650_v53 }
 0x4a8   : > { %v2599_v55 = vmul.f32 0.015625, %v2580_v36  ;;  %v2624_v41 = vmul.f32 %v5713_v14, %v5713_v14 }
 0x4aa   : > { %v5719_v15 = vsub.f32 %v5643_v25, %v2599_v55  ;;  %v2653_v0 = vsel %vm1445_vm2, %v2624_v41, 0.0 }
 0x4ab   : > { %2654 = vadd.xlane.f32.xlu1 %v2653_v0  ;;  %v2583_v8 = vpop.xlane.xlu0 %2582 }
 0x4ac   : > { %v2600_v23 = vmul.f32 0.015625, %v2583_v8  ;;  %v2625_v37 = vmul.f32 %v5719_v15, %v5719_v15 }
 0x4ae   : > { %v5725_v62 = vsub.f32 %v5649_v34, %v2600_v23  ;;  %v2656_v50 = vsel %vm1445_vm2, %v2625_v37, 0.0 }
 0x4af   : > { %v2586_v51 = vpop.xlane.xlu1 %2585  ;;  %2657 = vadd.xlane.f32.xlu0 %v2656_v50 }
 0x4b0   : > { %v2601_v3 = vmul.f32 0.015625, %v2586_v51  ;;  %v2626_v25 = vmul.f32 %v5725_v62, %v5725_v62 }
 0x4b2   : > { %v5731_v32 = vsub.f32 %v5655_v30, %v2601_v3  ;;  %v2659_v59 = vsel %vm1445_vm2, %v2626_v25, 0.0 }
 0x4b3   : > { %2660 = vadd.xlane.f32.xlu1 %v2659_v59  ;;  %v2589_v28 = vpop.xlane.xlu0 %2588 }
 0x4b4   : > { %v2602_v13 = vmul.f32 0.015625, %v2589_v28  ;;  %v2627_v34 = vmul.f32 %v5731_v32, %v5731_v32 }
 0x4b6   : > { %v5737_v11 = vsub.f32 %v5661_v38, %v2602_v13  ;;  %v2662_v12 = vsel %vm1445_vm2, %v2627_v34, 0.0 }
 0x4b7   : > { %2663 = vadd.xlane.f32.xlu0 %v2662_v12 }
 0x4b8   : > { %v2628_v17 = vmul.f32 %v5737_v11, %v5737_v11 }
 0x4ba   : > { %v2665_v30 = vsel %vm1445_vm2, %v2628_v17, 0.0 }
 0x4bb   : > { %2666 = vadd.xlane.f32.xlu1 %v2665_v30 }
 0x518   : > { %v2631_v39 = vpop.xlane.xlu1 %2630 }
 0x519   : > { %v2668_v2 = vmul.f32 0.015625, %v2631_v39 }
 0x51b   : > { %v2681_v20 = vadd.f32 1e-05, %v2668_v2 }
 0x51c   : > { %v2634_v42 = vpop.xlane.xlu0 %2633 }
 0x51d   : > { %4278 = vrsqrt.f32 %v2681_v20  ;;  %v2669_v58 = vmul.f32 0.015625, %v2634_v42 }
 0x51f   : > { %v2682_v26 = vadd.f32 1e-05, %v2669_v58 }
 0x520   : > { %v2637_v43 = vpop.xlane.xlu1 %2636 }
 0x521   : > { %4280 = vrsqrt.f32 %v2682_v26  ;;  %v2670_v38 = vmul.f32 0.015625, %v2637_v43 }
 0x523   : > { %v2683_v47 = vadd.f32 1e-05, %v2670_v38 }
 0x524   : > { %v2640_v24 = vpop.xlane.xlu0 %2639 }
 0x525   : > { %4282 = vrsqrt.f32 %v2683_v47  ;;  %v2671_v5 = vmul.f32 0.015625, %v2640_v24 }
 0x527   : > { %v4279_v29 = vpop.eup %4278  ;;  %v2684_v33 = vadd.f32 1e-05, %v2671_v5 }
 0x528   : > { %v2707_v54 = vmul.f32 %v4279_v29, %v5666_v31  ;;  %v2643_v10 = vpop.xlane.xlu1 %2642 }
 0x529   : > { %4284 = vrsqrt.f32 %v2684_v33  ;;  %v2672_v60 = vmul.f32 0.015625, %v2643_v10 }
 0x52a   : > { %v2727_v61 = vmul.f32 %v5747_v57, %v2707_v54 }
 0x52b   : > { %v4281_v22 = vpop.eup %4280  ;;  %v2685_v4 = vadd.f32 1e-05, %v2672_v60 }
 0x52c   : > { %v2747_v19 = vadd.f32 %v5753_v27, %v2727_v61  ;;  %v2708_v1 = vmul.f32 %v4281_v22, %v5671_v56  ;;  %v2646_v35 = vpop.xlane.xlu0 %2645 }
 0x52d   : > { %4286 = vrsqrt.f32 %v2685_v4  ;;  %v2673_v16 = vmul.f32 0.015625, %v2646_v35 }
 0x52e   : > { %2760 = vst.msk [vmem:[%s5758_s24] sm:$0xff] %vm1445_vm2, %v2747_v19  ;;  %v2728_v31 = vmul.f32 %v5747_v57, %v2708_v1 }
 0x52f   : > { %v4283_v48 = vpop.eup %4282  ;;  %v2686_v6 = vadd.f32 1e-05, %v2673_v16 }
 0x530   : > { %v2748_v45 = vadd.f32 %v5753_v27, %v2728_v31  ;;  %v2709_v63 = vmul.f32 %v4283_v48, %v5677_v7  ;;  %v2649_v21 = vpop.xlane.xlu1 %2648 }
 0x531   : > { %4288 = vrsqrt.f32 %v2686_v6  ;;  %v2674_v56 = vmul.f32 0.015625, %v2649_v21 }
 0x532   : > { %2761 = vst.msk [vmem:[%s5758_s24 + $0x8] sm:$0xff] %vm1445_vm2, %v2748_v45  ;;  %v2729_v40 = vmul.f32 %v5747_v57, %v2709_v63 }
 0x533   : > { %v4285_v49 = vpop.eup %4284  ;;  %v2687_v53 = vadd.f32 1e-05, %v2674_v56 }
 0x534   : > { %v2749_v36 = vadd.f32 %v5753_v27, %v2729_v40  ;;  %v2710_v55 = vmul.f32 %v4285_v49, %v5683_v44  ;;  %v2652_v41 = vpop.xlane.xlu0 %2651 }
 0x535   : > { %4290 = vrsqrt.f32 %v2687_v53  ;;  %v2675_v0 = vmul.f32 0.015625, %v2652_v41 }
 0x536   : > { %2762 = vst.msk [vmem:[%s5758_s24 + $0x10] sm:$0xff] %vm1445_vm2, %v2749_v36  ;;  %v2730_v7 = vmul.f32 %v5747_v57, %v2710_v55 }
 0x537   : > { %v4287_v8 = vpop.eup %4286  ;;  %v2688_v23 = vadd.f32 1e-05, %v2675_v0 }
 0x538   : > { %v2750_v37 = vadd.f32 %v5753_v27, %v2730_v7  ;;  %v2711_v50 = vmul.f32 %v4287_v8, %v5689_v9  ;;  %v2655_v51 = vpop.xlane.xlu1 %2654 }
 0x539   : > { %4292 = vrsqrt.f32 %v2688_v23  ;;  %v2676_v3 = vmul.f32 0.015625, %v2655_v51 }
 0x53a   : > { %2763 = vst.msk [vmem:[%s5758_s24 + $0x18] sm:$0xff] %vm1445_vm2, %v2750_v37  ;;  %v2731_v44 = vmul.f32 %v5747_v57, %v2711_v50 }
 0x53b   : > { %v4289_v25 = vpop.eup %4288  ;;  %v2689_v59 = vadd.f32 1e-05, %v2676_v3 }
 0x53c   : > { %v2751_v28 = vadd.f32 %v5753_v27, %v2731_v44  ;;  %v2712_v13 = vmul.f32 %v4289_v25, %v5695_v52  ;;  %v2658_v34 = vpop.xlane.xlu0 %2657 }
 0x53d   : > { %4294 = vrsqrt.f32 %v2689_v59  ;;  %v2677_v12 = vmul.f32 0.015625, %v2658_v34 }
 0x53e   : > { %2764 = vst.msk [vmem:[%s5758_s24 + $0x20] sm:$0xff] %vm1445_vm2, %v2751_v28  ;;  %v2732_v9 = vmul.f32 %v5747_v57, %v2712_v13 }
 0x53f   : > { %v4291_v17 = vpop.eup %4290  ;;  %v2690_v30 = vadd.f32 1e-05, %v2677_v12 }
 0x540   : > { %v2752_v39 = vadd.f32 %v5753_v27, %v2732_v9  ;;  %v2713_v2 = vmul.f32 %v4291_v17, %v5701_v46  ;;  %v2661_v20 = vpop.xlane.xlu1 %2660 }
 0x541   : > { %4296 = vrsqrt.f32 %v2690_v30  ;;  %v2678_v42 = vmul.f32 0.015625, %v2661_v20 }
 0x542   : > { %2765 = vst.msk [vmem:[%s5758_s24 + $0x28] sm:$0xff] %vm1445_vm2, %v2752_v39  ;;  %v2733_v52 = vmul.f32 %v5747_v57, %v2713_v2 }
 0x543   : > { %v4293_v58 = vpop.eup %4292  ;;  %v2691_v26 = vadd.f32 1e-05, %v2678_v42 }
 0x544   : > { %v2753_v43 = vadd.f32 %v5753_v27, %v2733_v52  ;;  %v2714_v38 = vmul.f32 %v4293_v58, %v5707_v18  ;;  %v2664_v47 = vpop.xlane.xlu0 %2663 }
 0x545   : > { %4298 = vrsqrt.f32 %v2691_v26  ;;  %v2679_v24 = vmul.f32 0.015625, %v2664_v47 }
 0x546   : > { %2766 = vst.msk [vmem:[%s5758_s24 + $0x30] sm:$0xff] %vm1445_vm2, %v2753_v43  ;;  %v2734_v46 = vmul.f32 %v5747_v57, %v2714_v38 }
 0x547   : > { %v4295_v5 = vpop.eup %4294  ;;  %v2692_v29 = vadd.f32 1e-05, %v2679_v24 }
 0x548   : > { %v2754_v33 = vadd.f32 %v5753_v27, %v2734_v46  ;;  %v2715_v54 = vmul.f32 %v4295_v5, %v5713_v14  ;;  %v2667_v10 = vpop.xlane.xlu1 %2666 }
 0x549   : > { %4300 = vrsqrt.f32 %v2692_v29  ;;  %v2680_v60 = vmul.f32 0.015625, %v2667_v10 }
 0x54a   : > { %2767 = vst.msk [vmem:[%s5758_s24 + $0x38] sm:$0xff] %vm1445_vm2, %v2754_v33  ;;  %v2735_v18 = vmul.f32 %v5747_v57, %v2715_v54 }
 0x54b   : > { %v4297_v61 = vpop.eup %4296  ;;  %v2693_v22 = vadd.f32 1e-05, %v2680_v60 }
 0x54c   : > { %v2755_v4 = vadd.f32 %v5753_v27, %v2735_v18  ;;  %v2716_v19 = vmul.f32 %v4297_v61, %v5719_v15 }
 0x54d   : > { %4302 = vrsqrt.f32 %v2693_v22 }
 0x54e   : > { %2768 = vst.msk [vmem:[%s5758_s24 + $0x40] sm:$0xff] %vm1445_vm2, %v2755_v4  ;;  %v2736_v14 = vmul.f32 %v5747_v57, %v2716_v19 }
 0x54f   : > { %v4299_v1 = vpop.eup %4298 }
 0x550   : > { %v2756_v35 = vadd.f32 %v5753_v27, %v2736_v14  ;;  %v2717_v16 = vmul.f32 %v4299_v1, %v5725_v62 }
 0x552   : > { %2769 = vst.msk [vmem:[%s5758_s24 + $0x48] sm:$0xff] %vm1445_vm2, %v2756_v35  ;;  %v2737_v31 = vmul.f32 %v5747_v57, %v2717_v16 }
 0x553   : > { %v4301_v48 = vpop.eup %4300 }
 0x554   : > { %v2757_v6 = vadd.f32 %v5753_v27, %v2737_v31  ;;  %v2718_v15 = vmul.f32 %v4301_v48, %v5731_v32 }
 0x556   : > { %2770 = vst.msk [vmem:[%s5758_s24 + $0x50] sm:$0xff] %vm1445_vm2, %v2757_v6  ;;  %v2738_v45 = vmul.f32 %v5747_v57, %v2718_v15 }
 0x557   : > { %v4303_v63 = vpop.eup %4302 }
 0x558   : > { %v2758_v21 = vadd.f32 %v5753_v27, %v2738_v45  ;;  %v2719_v56 = vmul.f32 %v4303_v63, %v5737_v11  ;;  %2779 = sbr.rel (!%p4464_p4) target bundleno = 1436 (0x59c), region = 52 }
 0x55a   : > { %2771 = vst.msk [vmem:[%s5758_s24 + $0x58] sm:$0xff] %vm1445_vm2, %v2758_v21  ;;  %v2739_v62 = vmul.f32 %v5747_v57, %v2719_v56 }
 0x55c   : > { %v2759_v40 = vadd.f32 %v5753_v27, %v2739_v62 }
 0x55e   : > { %2772 = vst.msk [vmem:[%s5758_s24 + $0x60] sm:$0xff] %vm1445_vm2, %v2759_v40 }
 0x55f   : > { %s5964_s17 = smov (!%p2782_p8, %s2781_s17), 13 }
 0x560   : > { %s3047_s23 = sshll.u32 %s5964_s17, 7 }
 0x561   : > { %p3050_p9 = scmp.eq.s32.totalorder %s3047_s23, 0 }
 0x562   : > { %4304 = sdivrem.u32 (!%p3050_p9), %s5964_s17, 13 }
 0x563   : > { %2790 = sbr.rel (%p3050_p9) target bundleno = 1436 (0x59c), region = 56 }
 0x56b   : > { %s5834_s9 = spop.drf %4304 }
 0x56c   : > { %p3051_p10 = scmp.le.s32.totalorder %s5834_s9, 0 }
 0x56d   : > { %s5957_s27 = smov (!%p3051_p10), %s5828_s22  ;;  %s5958_s18 = smov (!%p3051_p10), %s5758_s24 }
 0x56e   : > { %2994 = sbr.rel (%p3051_p10) target bundleno = 1407 (0x57f), region = 132  ;;  %s5843_s26 = smov (!%p3051_p10), 0  }
 0x56f   : > { %s5845_s29 = smov (!%p3051_p10), 0  }
 0x575 LB: >> { %v2878_v32 = vld [vmem:[%s4370_s18] sm:$0xff]  ;;  %v2880_v11 = vld [vmem:[%s4370_s18 + $0x8] sm:$0xff]  ;;  %v2882_v57 = vld [vmem:[%s4370_s18 + $0x10] sm:$0xff]  ;;  %s2904_s30 = sadd.s32 1, %s4374_s26  ;;  %s2872_s29 = sadd.s32 1, %s4378_s29   ;;  %s4378_s29 = sphi %s5845_s29, %s2872_s29   ;;  %s4374_s26 = sphi %s5843_s26, %s5959_s26   ;;  %s4370_s18 = sphi %s5958_s18, %s2909_s18   ;;  %s4366_s27 = sphi %s5957_s27, %s2910_s27  }
 0x576   : >> { %2879 = vst [vmem:[%s4366_s27] sm:$0xff] %v2878_v32  ;;  %2881 = vst [vmem:[%s4366_s27 + $0x8] sm:$0xff] %v2880_v11  ;;  %v2884_v27 = vld [vmem:[%s4370_s18 + $0x18] sm:$0xff]  ;;  %v2886_v49 = vld [vmem:[%s4370_s18 + $0x20] sm:$0xff]  ;;  %p2905_p11 = scmp.ge.s32.totalorder %s2904_s30, %s5834_s9  ;;  %p2871_p12 = scmp.ge.s32.totalorder %s2872_s29, %s5834_s9 }
 0x577   : >> { %2883 = vst [vmem:[%s4366_s27 + $0x10] sm:$0xff] %v2882_v57  ;;  %v2888_v53 = vld [vmem:[%s4370_s18 + $0x28] sm:$0xff]  ;;  %2885 = vst [vmem:[%s4366_s27 + $0x18] sm:$0xff] %v2884_v27  ;;  %v2890_v36 = vld [vmem:[%s4370_s18 + $0x30] sm:$0xff] }
 0x578   : >> { %2887 = vst [vmem:[%s4366_s27 + $0x20] sm:$0xff] %v2886_v49  ;;  %2889 = vst [vmem:[%s4366_s27 + $0x28] sm:$0xff] %v2888_v53  ;;  %v2892_v55 = vld [vmem:[%s4370_s18 + $0x38] sm:$0xff]  ;;  %v2894_v41 = vld [vmem:[%s4370_s18 + $0x40] sm:$0xff]  ;;  %s5966_s30 = smov (%p2905_p11, %s2904_s30), 0  ;;  %2874 = sbr.rel (!%p2871_p12) target bundleno = 1397 (0x575), region = 138 }
 0x579   : >> { %2891 = vst [vmem:[%s4366_s27 + $0x30] sm:$0xff] %v2890_v36  ;;  %2893 = vst [vmem:[%s4366_s27 + $0x38] sm:$0xff] %v2892_v55  ;;  %v2896_v0 = vld [vmem:[%s4370_s18 + $0x48] sm:$0xff]  ;;  %v2898_v7 = vld [vmem:[%s4370_s18 + $0x50] sm:$0xff]  ;;  %s2907_s10 = smul.u32 104, %s5966_s30  ;;  %s5959_s26 = smov %s5966_s30 }
 0x57a   : >> { %2895 = vst [vmem:[%s4366_s27 + $0x40] sm:$0xff] %v2894_v41  ;;  %v2900_v8 = vld [vmem:[%s4370_s18 + $0x58] sm:$0xff]  ;;  %2897 = vst [vmem:[%s4366_s27 + $0x48] sm:$0xff] %v2896_v0  ;;  %v2902_v23 = vld [vmem:[%s4370_s18 + $0x60] sm:$0xff] }
 0x57b   : >> { %2899 = vst [vmem:[%s4366_s27 + $0x50] sm:$0xff] %v2898_v7  ;;  %2901 = vst [vmem:[%s4366_s27 + $0x58] sm:$0xff] %v2900_v8  ;;  %s2909_s18 = scalar_lea.vmem %s5758_s24, %s2907_s10 [#allocation2]  }
 0x57c   : >> { %2903 = vst [vmem:[%s4366_s27 + $0x60] sm:$0xff] %v2902_v23  ;;  %s2910_s27 = scalar_lea.vmem %s5828_s22, %s2907_s10  }
 0x57f PF: > { %4306 = sdivrem.u32 %s5964_s17, 13 }
 0x580   : > { %s3052_s11 = smul.u32 104, %s5834_s9 }
 0x582   : > { %s2915_s12 = scalar_lea.vmem %s5758_s24, %s3052_s11 [#allocation2]   ;;  %s2917_s13 = scalar_lea.vmem %s5828_s22, %s3052_s11  }
 0x588   : > { %s4307_s14 = spop.drf %4306 }
 0x589   : > { %p3054_p13 = scmp.le.s32.totalorder %s4307_s14, 0 }
 0x58a   : > { %s4380_s15 = smov (!%p3054_p13), %s2917_s13   ;;  %s4384_s16 = smov (!%p3054_p13), %s2915_s12  }
 0x58b   : > { %3008 = sbr.rel (%p3054_p13) target bundleno = 1436 (0x59c), region = 143  ;;  %s4388_s19 = smov (!%p3054_p13), 0  }
 0x58c   : > { %s4392_s20 = smov (!%p3054_p13), 0  }
 0x592 LB: >> { %v2927_v37 = vld [vmem:[%s4386_s16] sm:$0xff]  ;;  %s2929_s21 = sadd.s32 1, %s4390_s19  ;;  %s2921_s20 = sadd.s32 1, %s4394_s20   ;;  %s4394_s20 = sphi %s4392_s20, %s2921_s20   ;;  %s4390_s19 = sphi %s4388_s19, %s4389_s19   ;;  %s4386_s16 = sphi %s4384_s16, %s2934_s16   ;;  %s4382_s15 = sphi %s4380_s15, %s2935_s15  }
 0x593   : >> { %2928 = vst [vmem:[%s4382_s15] sm:$0xff] %v2927_v37  ;;  %p2930_p0 = scmp.ge.s32.totalorder %s2929_s21, %s4307_s14  ;;  %p2920_p1 = scmp.ge.s32.totalorder %s2921_s20, %s4307_s14 }
 0x595   : >> { %s5968_s21 = smov (%p2930_p0, %s2929_s21), 0  ;;  %2923 = sbr.rel (!%p2920_p1) target bundleno = 1426 (0x592), region = 149 }
 0x596   : >> { %s3055_s24 = sshll.u32 %s5968_s21, 3  ;;  %s4389_s19 = smov %s5968_s21  }
 0x597   : >> { %s2934_s16 = scalar_lea.vmem %s2915_s12, %s3055_s24 [#allocation2]   ;;  %s2935_s15 = scalar_lea.vmem %s2917_s13, %s3055_s24  }
 0x59c PF: > { %p14_p2 = scmp.ge.s32.totalorder %s4454_s28, 4   ;;  %s5960_s24 = smov %s4358_s25 }
 0x59d   : > { %s5961_s25 = smov %s4462_s8  ;;  %s5962_s26 = smov %s4454_s28 }
 0x59e   :  { %16 = sbr.rel (!%p14_p2) target bundleno = 2 (0x2), region = 160 }

</bundles_post_ra>
